<compile_context>
chip_gen: v5e
topology: v5e:2x2
jax: 0.10.0
libtpu: 0.0.40
codegen_flags: <defaults>
</compile_context>

<pallas_src>
import functools

import jax
import jax.numpy as jnp
from jax.experimental import pallas as pl
from jax.experimental.pallas import tpu as pltpu

_EPS = 1e-5
_LANE = 128
_SUB = 8
_VMEM_LIMIT = 48 * 1024 * 1024   # < v7x's 64 MiB physical, > default scoped limit


# ----------------------------------------------------------------------------
# small helpers
# ----------------------------------------------------------------------------
def _round_up(x, m):
    return (x + m - 1) // m * m


def _pad2d(a, rows, cols):
    r, c = a.shape
    if r == rows and c == cols:
        return a
    return jnp.pad(a, ((0, rows - r), (0, cols - c)))


def _choose_tm(m):
    # 256-512 row tiles: big enough to amortize the ~0.35us per-grid-step
    # overhead and hit the HBM roofline, small enough for v7x's 64 MiB VMEM
    # with double buffering. (v6e/v5e could go to 1024; kept v7x-safe.)
    if m >= 1024:
        return 512
    if m >= 256:
        return 256
    return _round_up(max(m, _SUB), _SUB)


def _choose_k(k_raw):
    """Pad / block the contraction dim.

    <= 128     : pad to 8  (tiny C: avoid byte blow-up), single K block.
    129..1024  : pad to 128 (clean MXU lanes), single resident K block.
    > 1024     : pad to 512 and block K at 512 -> LHS/weight tiles stay small
                 enough for deep double-buffering inside v7x's 64 MiB VMEM.
    """
    if k_raw <= _LANE:
        kp = _round_up(k_raw, _SUB)
        return kp, kp
    if k_raw <= 1024:
        kp = _round_up(k_raw, _LANE)
        return kp, kp
    kp = _round_up(k_raw, 512)
    return kp, 512


def _mosaic_params(n_axes):
    # M-tiles shard across TensorCores (v7x); K axis (if present) is a reduction.
    sem = ("parallel",) + ("arbitrary",) * (n_axes - 1)
    return pltpu.CompilerParams(dimension_semantics=sem,
                                vmem_limit_bytes=_VMEM_LIMIT)


# ----------------------------------------------------------------------------
# Pallas kernels
# ----------------------------------------------------------------------------
def _conv_stats_kernel(a_ref, w_ref, y_ref, st_ref):
    """y += a @ w (f32 acc, K-blocked); on the last K step emit BN partials."""
    k = pl.program_id(1)

    @pl.when(k == 0)
    def _():
        y_ref[...] = jnp.zeros_like(y_ref)

    y_ref[...] += jnp.dot(a_ref[...], w_ref[...],
                          preferred_element_type=jnp.float32)

    @pl.when(k == pl.num_programs(1) - 1)
    def _():
        y = y_ref[...]
        st_ref[0:1, :] = jnp.sum(y, axis=0, keepdims=True)
        st_ref[1:2, :] = jnp.sum(y * y, axis=0, keepdims=True)


def _conv2_ds_stats_kernel(a_ref, w_ref, xs_ref, wd_ref, y_ref, st2_ref, std_ref):
    """conv2 matmul (K-blocked) + its BN partials, plus BN partials of the
    (not stored) 1x1 downsample conv yd = xs @ wd, computed once on the last
    K step. yd itself is recomputed in the final fused kernel (never hits HBM)."""
    k = pl.program_id(1)

    @pl.when(k == 0)
    def _():
        y_ref[...] = jnp.zeros_like(y_ref)

    y_ref[...] += jnp.dot(a_ref[...], w_ref[...],
                          preferred_element_type=jnp.float32)

    @pl.when(k == pl.num_programs(1) - 1)
    def _():
        y = y_ref[...]
        st2_ref[0:1, :] = jnp.sum(y, axis=0, keepdims=True)
        st2_ref[1:2, :] = jnp.sum(y * y, axis=0, keepdims=True)
        yd = jnp.dot(xs_ref[...], wd_ref[...], preferred_element_type=jnp.float32)
        std_ref[0:1, :] = jnp.sum(yd, axis=0, keepdims=True)
        std_ref[1:2, :] = jnp.sum(yd * yd, axis=0, keepdims=True)


def _bn_relu_kernel(x_ref, sc_ref, sh_ref, o_ref):
    """relu(x * scale + shift); output cast to the (bf16) matmul dtype."""
    o_ref[...] = jnp.maximum(x_ref[...] * sc_ref[...] + sh_ref[...],
                             0.0).astype(o_ref.dtype)


def _final_ds_kernel(y_ref, s2_ref, b2_ref, xs_ref, wd_ref, sd_ref, bd_ref, o_ref):
    """relu( bn2(conv2_out) + bn_d(1x1 downsample) ), downsample recomputed in-tile."""
    y2n = y_ref[...] * s2_ref[...] + b2_ref[...]
    yd = jnp.dot(xs_ref[...], wd_ref[...], preferred_element_type=jnp.float32)
    ydn = yd * sd_ref[...] + bd_ref[...]
    o_ref[...] = jnp.maximum(y2n + ydn, 0.0)


def _final_id_kernel(y_ref, s2_ref, b2_ref, r_ref, o_ref):
    """relu( bn2(conv2_out) + residual )."""
    res = r_ref[...].astype(jnp.float32)
    o_ref[...] = jnp.maximum(y_ref[...] * s2_ref[...] + b2_ref[...] + res, 0.0)


# ----------------------------------------------------------------------------
# pallas_call wrappers
# ----------------------------------------------------------------------------
def conv_stats(a, w, tm, tk):
    m, kdim = a.shape
    n = w.shape[1]
    mt, kt = m // tm, kdim // tk
    return pl.pallas_call(
        _conv_stats_kernel,
        out_shape=(jax.ShapeDtypeStruct((m, n), jnp.float32),
                   jax.ShapeDtypeStruct((mt, 2, n), jnp.float32)),
        grid=(mt, kt),
        in_specs=[pl.BlockSpec((tm, tk), lambda i, k: (i, k)),
                  pl.BlockSpec((tk, n), lambda i, k: (k, 0))],
        out_specs=[pl.BlockSpec((tm, n), lambda i, k: (i, 0)),
                   pl.BlockSpec((None, 2, n), lambda i, k: (i, 0, 0))],
        compiler_params=_mosaic_params(2),
    )(a, w)


def conv2_downsample_stats(a, w, xs, wd, tm, tk):
    m, kdim = a.shape
    n = w.shape[1]
    kd = xs.shape[1]
    mt, kt = m // tm, kdim // tk
    return pl.pallas_call(
        _conv2_ds_stats_kernel,
        out_shape=(jax.ShapeDtypeStruct((m, n), jnp.float32),
                   jax.ShapeDtypeStruct((mt, 2, n), jnp.float32),
                   jax.ShapeDtypeStruct((mt, 2, n), jnp.float32)),
        grid=(mt, kt),
        in_specs=[pl.BlockSpec((tm, tk), lambda i, k: (i, k)),
                  pl.BlockSpec((tk, n), lambda i, k: (k, 0)),
                  pl.BlockSpec((tm, kd), lambda i, k: (i, 0)),
                  pl.BlockSpec((kd, n), lambda i, k: (0, 0))],
        out_specs=[pl.BlockSpec((tm, n), lambda i, k: (i, 0)),
                   pl.BlockSpec((None, 2, n), lambda i, k: (i, 0, 0)),
                   pl.BlockSpec((None, 2, n), lambda i, k: (i, 0, 0))],
        compiler_params=_mosaic_params(2),
    )(a, w, xs, wd)


def bn_relu(x, scale, shift, tm, out_dtype):
    m, n = x.shape
    mt = m // tm
    return pl.pallas_call(
        _bn_relu_kernel,
        out_shape=jax.ShapeDtypeStruct((m, n), out_dtype),
        grid=(mt,),
        in_specs=[pl.BlockSpec((tm, n), lambda i: (i, 0)),
                  pl.BlockSpec((1, n), lambda i: (0, 0)),
                  pl.BlockSpec((1, n), lambda i: (0, 0))],
        out_specs=pl.BlockSpec((tm, n), lambda i: (i, 0)),
        compiler_params=_mosaic_params(1),
    )(x, scale, shift)


def final_downsample(y2, sc2, sh2, xs, wd, scd, shd, tm):
    m, n = y2.shape
    kd = xs.shape[1]
    mt = m // tm
    return pl.pallas_call(
        _final_ds_kernel,
        out_shape=jax.ShapeDtypeStruct((m, n), jnp.float32),
        grid=(mt,),
        in_specs=[pl.BlockSpec((tm, n), lambda i: (i, 0)),
                  pl.BlockSpec((1, n), lambda i: (0, 0)),
                  pl.BlockSpec((1, n), lambda i: (0, 0)),
                  pl.BlockSpec((tm, kd), lambda i: (i, 0)),
                  pl.BlockSpec((kd, n), lambda i: (0, 0)),
                  pl.BlockSpec((1, n), lambda i: (0, 0)),
                  pl.BlockSpec((1, n), lambda i: (0, 0))],
        out_specs=pl.BlockSpec((tm, n), lambda i: (i, 0)),
        compiler_params=_mosaic_params(1),
    )(y2, sc2, sh2, xs, wd, scd, shd)


def final_identity(y2, sc2, sh2, res, tm):
    m, n = y2.shape
    mt = m // tm
    return pl.pallas_call(
        _final_id_kernel,
        out_shape=jax.ShapeDtypeStruct((m, n), jnp.float32),
        grid=(mt,),
        in_specs=[pl.BlockSpec((tm, n), lambda i: (i, 0)),
                  pl.BlockSpec((1, n), lambda i: (0, 0)),
                  pl.BlockSpec((1, n), lambda i: (0, 0)),
                  pl.BlockSpec((tm, n), lambda i: (i, 0))],
        out_specs=pl.BlockSpec((tm, n), lambda i: (i, 0)),
        compiler_params=_mosaic_params(1),
    )(y2, sc2, sh2, res)


# ----------------------------------------------------------------------------
# JAX-side glue: im2col, BN coefficient combine (tiny, O(C)), parameters
# ----------------------------------------------------------------------------
def _im2col_3x3(x_nhwc, stride):
    """3x3 / pad=1 patches: (N,H,W,C) -> ((N*Ho*Wo, 9*C), Ho, Wo).

    Done in the matmul dtype (bf16 by default) so the dominant patch-matrix
    write + read is half the bytes of the f32 activations.
    """
    N, H, W, C = x_nhwc.shape
    Ho = (H + 2 - 3) // stride + 1
    Wo = (W + 2 - 3) // stride + 1
    xp = jnp.pad(x_nhwc, ((0, 0), (1, 1), (1, 1), (0, 0)))
    cols = []
    for kh in range(3):
        for kw in range(3):
            cols.append(xp[:,
                           kh:kh + (Ho - 1) * stride + 1:stride,
                           kw:kw + (Wo - 1) * stride + 1:stride, :])
    patches = jnp.concatenate(cols, axis=-1)        # (N, Ho, Wo, 9*C)
    return patches.reshape(N * Ho * Wo, 9 * C), Ho, Wo


def _bn_coeffs(stats, count, gamma_p, beta_p):
    """Combine per-tile (sum, sumsq) partials -> per-channel scale/shift.

    Tiny O(num_tiles * C) work; the heavy per-row reductions already ran inside
    the conv kernels' epilogues. One-pass variance E[x^2] - mean^2 (f32).
    Zero-padded channels (gamma=beta=0) and zero-padded rows are exact no-ops.
    """
    s = jnp.sum(stats[:, 0, :], axis=0, keepdims=True)     # (1, Cp)
    ss = jnp.sum(stats[:, 1, :], axis=0, keepdims=True)    # (1, Cp)
    mean = s / count
    var = jnp.maximum(ss / count - mean * mean, 0.0)
    inv = jax.lax.rsqrt(var + _EPS)
    scale = gamma_p * inv
    shift = beta_p - mean * scale
    return scale, shift


def init_params(key, in_channels, out_channels):
    k1, k2, k3 = jax.random.split(key, 3)
    # conv weights stored as (kh*kw*Cin, Cout), ready for the im2col matmul.
    w1 = jax.random.normal(k1, (3, 3, in_channels, out_channels), jnp.float32) * 0.1
    w2 = jax.random.normal(k2, (3, 3, out_channels, out_channels), jnp.float32) * 0.1
    wd = jax.random.normal(k3, (1, 1, in_channels, out_channels), jnp.float32) * 0.1
    ones = jnp.ones((1, out_channels), jnp.float32)    # BN gamma (PyTorch init)
    zeros = jnp.zeros((1, out_channels), jnp.float32)  # BN beta  (PyTorch init)
    return {
        "w1": w1.reshape(9 * in_channels, out_channels),
        "w2": w2.reshape(9 * out_channels, out_channels),
        "wd": wd.reshape(in_channels, out_channels),
        "g1": ones, "b1": zeros,
        "g2": ones, "b2": zeros,
        "gd": ones, "bd": zeros,
    }


# ----------------------------------------------------------------------------
# Full forward pass (NCHW in / NCHW out, PyTorch convention)
# ----------------------------------------------------------------------------
def skip_connection_block(x_nchw, params, stride=1, use_bf16_matmul=True):
    x = jnp.transpose(x_nchw, (0, 2, 3, 1)).astype(jnp.float32)   # -> NHWC (f32)
    mm_dtype = jnp.bfloat16 if use_bf16_matmul else jnp.float32
    xm = x.astype(mm_dtype)          # cast BEFORE im2col: half-size patch matrices
    N, H, W, Cin = x.shape
    Cout = params["w1"].shape[1]
    cp = _round_up(Cout, _LANE)                                   # lane-padded Cout

    # ---- conv1 (3x3, stride, pad=1, no bias) + bn1 partial stats ----
    a1, Ho, Wo = _im2col_3x3(xm, stride)
    M = N * Ho * Wo
    tm = _choose_tm(M)
    m_pad = _round_up(M, tm)
    k1p, tk1 = _choose_k(9 * Cin)
    a1p = _pad2d(a1, m_pad, k1p)
    w1p = _pad2d(params["w1"].astype(mm_dtype), k1p, cp)
    y1, st1 = conv_stats(a1p, w1p, tm, tk1)                       # (m_pad, cp) f32

    g1 = _pad2d(params["g1"], 1, cp)
    b1 = _pad2d(params["b1"], 1, cp)
    sc1, sh1 = _bn_coeffs(st1, M, g1, b1)

    # ---- bn1 + relu (tiled, lane-dense), stored directly in the matmul dtype ----
    h1 = bn_relu(y1, sc1, sh1, tm, mm_dtype)                      # (m_pad, cp)
    h1_img = h1[:M, :Cout].reshape(N, Ho, Wo, Cout)

    # ---- conv2 (3x3, stride 1, pad=1, no bias) + bn2 stats (+ downsample stats) ----
    a2, Ho2, Wo2 = _im2col_3x3(h1_img, 1)                         # M2 == M
    k2p, tk2 = _choose_k(9 * Cout)
    a2p = _pad2d(a2, m_pad, k2p)
    w2p = _pad2d(params["w2"].astype(mm_dtype), k2p, cp)
    g2 = _pad2d(params["g2"], 1, cp)
    b2 = _pad2d(params["b2"], 1, cp)

    sizes_differ = (Cin != Cout) or ((H, W) != (Ho2, Wo2))
    if sizes_differ:
        cinp, _ = _choose_k(Cin)                                  # single-block 1x1 conv
        xs = xm[:, ::stride, ::stride, :].reshape(M, Cin)         # 1x1-conv input
        xsp = _pad2d(xs, m_pad, cinp)
        wdp = _pad2d(params["wd"].astype(mm_dtype), cinp, cp)
        gd = _pad2d(params["gd"], 1, cp)
        bd = _pad2d(params["bd"], 1, cp)

        y2, st2, std = conv2_downsample_stats(a2p, w2p, xsp, wdp, tm, tk2)
        sc2, sh2 = _bn_coeffs(st2, M, g2, b2)
        scd, shd = _bn_coeffs(std, M, gd, bd)
        # final fused kernel recomputes the tiny 1x1 dot in-tile -> yd never hits HBM
        out_flat = final_downsample(y2, sc2, sh2, xsp, wdp, scd, shd, tm)
    else:
        y2, st2 = conv_stats(a2p, w2p, tm, tk2)
        sc2, sh2 = _bn_coeffs(st2, M, g2, b2)
        # identity residual kept in f32 (it is not a matmul input); skip the
        # padding copy entirely when no padding is actually required.
        res = x.reshape(M, Cin)
        resp = res if (M == m_pad and Cin == cp) else _pad2d(res, m_pad, cp)
        out_flat = final_identity(y2, sc2, sh2, resp, tm)

    out = out_flat[:M, :Cout].reshape(N, Ho2, Wo2, Cout)
    return jnp.transpose(out, (0, 3, 1, 2))                       # -> NCHW


if __name__ == "__main__":
    key = jax.random.PRNGKey(0)
    kx, kp = jax.random.split(key)

    batch, in_channels, out_channels, spatial, stride = 2, 4, 8, 16, 1
    x = jax.random.normal(kx, (batch, in_channels, spatial, spatial), jnp.float32)
    params = init_params(kp, in_channels, out_channels)

    fwd = jax.jit(functools.partial(skip_connection_block, stride=stride))
    out = fwd(x, params)
    jax.block_until_ready(out)
    assert out.shape == (batch, out_channels, spatial, spatial)
    assert bool(jnp.all(jnp.isfinite(out)))
    print("KERNEL_OK")
</pallas_src>

<mosaic_0001>
module attributes {stable_mosaic.version = 11 : i64} {
  func.func @_conv_stats_kernel(%arg0: i32, %arg1: i32, %arg2: memref<256x40xbf16, #tpu.memory_space<vmem>>, %arg3: memref<40x128xbf16, #tpu.memory_space<vmem>>, %arg4: memref<256x128xf32, #tpu.memory_space<vmem>>, %arg5: memref<1x2x128xf32, #tpu.memory_space<vmem>>) attributes {dimension_semantics = [#tpu.dimension_semantics<parallel>, #tpu.dimension_semantics<arbitrary>], iteration_bounds = array<i64: 2, 1>, scalar_prefetch = 0 : i64, scratch_operands = 0 : i64, tpu.core_type = #tpu.core_type<tc>, window_params = [{transform_indices = @transform_0, window_bounds = array<i64: 256, 40>}, {transform_indices = @transform_1, window_bounds = array<i64: 40, 128>}, {transform_indices = @transform_2, window_bounds = array<i64: 256, 128>}, {transform_indices = @transform_3, window_bounds = array<i64: 1, 2, 128>}]} {
    %c0_i32 = arith.constant 0 : i32
    %0 = arith.cmpi eq, %arg1, %c0_i32 : i32
    %1 = arith.extui %0 : i1 to i32
    %c0_i32_0 = arith.constant 0 : i32
    %2 = arith.cmpi ne, %1, %c0_i32_0 : i32
    scf.if %2 {
      %cst_10 = arith.constant 0.000000e+00 : f32
      %12 = vector.broadcast %cst_10 : f32 to vector<256x128xf32>
      %c0_11 = arith.constant 0 : index
      %c0_12 = arith.constant 0 : index
      %13 = vector.load %arg4[%c0_11, %c0_12] : memref<256x128xf32, #tpu.memory_space<vmem>>, vector<256x128xf32>
      tpu.vector_store %arg4[%c0_11, %c0_12], %12 {strides = array<i32>} : memref<256x128xf32, #tpu.memory_space<vmem>>, vector<256x128xf32>,
    } else {
    }
    %c0 = arith.constant 0 : index
    %c0_1 = arith.constant 0 : index
    %3 = vector.load %arg4[%c0, %c0_1] : memref<256x128xf32, #tpu.memory_space<vmem>>, vector<256x128xf32>
    %c0_2 = arith.constant 0 : index
    %c0_3 = arith.constant 0 : index
    %4 = vector.load %arg2[%c0_2, %c0_3] : memref<256x40xbf16, #tpu.memory_space<vmem>>, vector<256x40xbf16>
    %c0_4 = arith.constant 0 : index
    %c0_5 = arith.constant 0 : index
    %5 = vector.load %arg3[%c0_4, %c0_5] : memref<40x128xbf16, #tpu.memory_space<vmem>>, vector<40x128xbf16>
    %cst = arith.constant dense<0.000000e+00> : vector<256x128xf32>
    %6 = tpu.matmul %4, %5, %cst {dimension_numbers = #tpu.dot_dimension_numbers<[1], [0], [0], [1], [0, 0, 1, 1], [], []>} : vector<256x40xbf16>, vector<40x128xbf16>, vector<256x128xf32> -> vector<256x128xf32>
    %7 = arith.addf %3, %6 : vector<256x128xf32>
    %c0_6 = arith.constant 0 : index
    %c0_7 = arith.constant 0 : index
    %8 = vector.load %arg4[%c0_6, %c0_7] : memref<256x128xf32, #tpu.memory_space<vmem>>, vector<256x128xf32>
    tpu.vector_store %arg4[%c0_6, %c0_7], %7 {strides = array<i32>} : memref<256x128xf32, #tpu.memory_space<vmem>>, vector<256x128xf32>,
    %c0_i32_8 = arith.constant 0 : i32
    %9 = arith.cmpi eq, %arg1, %c0_i32_8 : i32
    %10 = arith.extui %9 : i1 to i32
    %c0_i32_9 = arith.constant 0 : i32
    %11 = arith.cmpi ne, %10, %c0_i32_9 : i32
    scf.if %11 {
      %c0_10 = arith.constant 0 : index
      %c0_11 = arith.constant 0 : index
      %12 = vector.load %arg4[%c0_10, %c0_11] : memref<256x128xf32, #tpu.memory_space<vmem>>, vector<256x128xf32>
      %cst_12 = arith.constant dense<0.000000e+00> : vector<128xf32>
      %13 = vector.multi_reduction <add>, %12, %cst_12 [0] : vector<256x128xf32> to vector<128xf32>
      %14 = vector.shape_cast %13 : vector<128xf32> to vector<1x128xf32>
      %c0_13 = arith.constant 0 : index
      %c0_14 = arith.constant 0 : index
      %c0_15 = arith.constant 0 : index
      %15 = vector.load %arg5[%c0_13, %c0_14, %c0_15] : memref<1x2x128xf32, #tpu.memory_space<vmem>>, vector<1x1x128xf32>
      %16 = vector.shape_cast %15 : vector<1x1x128xf32> to vector<1x128xf32>
      %17 = vector.shape_cast %14 : vector<1x128xf32> to vector<1x1x128xf32>
      tpu.vector_store %arg5[%c0_13, %c0_14, %c0_15], %17 {strides = array<i32>} : memref<1x2x128xf32, #tpu.memory_space<vmem>>, vector<1x1x128xf32>,
      %18 = arith.mulf %12, %12 : vector<256x128xf32>
      %cst_16 = arith.constant dense<0.000000e+00> : vector<128xf32>
      %19 = vector.multi_reduction <add>, %18, %cst_16 [0] : vector<256x128xf32> to vector<128xf32>
      %20 = vector.shape_cast %19 : vector<128xf32> to vector<1x128xf32>
      %c0_17 = arith.constant 0 : index
      %c1 = arith.constant 1 : index
      %c0_18 = arith.constant 0 : index
      %21 = vector.load %arg5[%c0_17, %c1, %c0_18] : memref<1x2x128xf32, #tpu.memory_space<vmem>>, vector<1x1x128xf32>
      %22 = vector.shape_cast %21 : vector<1x1x128xf32> to vector<1x128xf32>
      %23 = vector.shape_cast %20 : vector<1x128xf32> to vector<1x1x128xf32>
      tpu.vector_store %arg5[%c0_17, %c1, %c0_18], %23 {strides = array<i32>} : memref<1x2x128xf32, #tpu.memory_space<vmem>>, vector<1x1x128xf32>,
    } else {
    }
    return
  }
  func.func @transform_0(%arg0: i32, %arg1: i32) -> (i32, i32) {
    %c0_i32 = arith.constant 0 : i32
    return %arg0, %arg1 : i32, i32
  }
  func.func @transform_1(%arg0: i32, %arg1: i32) -> (i32, i32) {
    %c0_i32 = arith.constant 0 : i32
    %c0_i32_0 = arith.constant 0 : i32
    return %arg1, %c0_i32 : i32, i32
  }
  func.func @transform_2(%arg0: i32, %arg1: i32) -> (i32, i32) {
    %c0_i32 = arith.constant 0 : i32
    %c0_i32_0 = arith.constant 0 : i32
    return %arg0, %c0_i32 : i32, i32
  }
  func.func @transform_3(%arg0: i32, %arg1: i32) -> (i32, i32, i32) {
    %c0_i32 = arith.constant 0 : i32
    %c0_i32_0 = arith.constant 0 : i32
    %c0_i32_1 = arith.constant 0 : i32
    return %arg0, %c0_i32, %c0_i32_0 : i32, i32, i32
  }
}

module attributes {stable_mosaic.version = 11 : i64} {
  func.func @_bn_relu_kernel(%arg0: i32, %arg1: memref<256x128xf32, #tpu.memory_space<vmem>>, %arg2: memref<1x128xf32, #tpu.memory_space<vmem>>, %arg3: memref<1x128xf32, #tpu.memory_space<vmem>>, %arg4: memref<256x128xbf16, #tpu.memory_space<vmem>>) attributes {dimension_semantics = [#tpu.dimension_semantics<parallel>], iteration_bounds = array<i64: 2>, scalar_prefetch = 0 : i64, scratch_operands = 0 : i64, tpu.core_type = #tpu.core_type<tc>, window_params = [{transform_indices = @transform_0, window_bounds = array<i64: 256, 128>}, {pipeline_mode = #tpu.pipeline_mode<synchronous>, transform_indices = @transform_1, window_bounds = array<i64: 1, 128>}, {pipeline_mode = #tpu.pipeline_mode<synchronous>, transform_indices = @transform_2, window_bounds = array<i64: 1, 128>}, {transform_indices = @transform_3, window_bounds = array<i64: 256, 128>}]} {
    %c0 = arith.constant 0 : index
    %c0_0 = arith.constant 0 : index
    %0 = vector.load %arg1[%c0, %c0_0] : memref<256x128xf32, #tpu.memory_space<vmem>>, vector<256x128xf32>
    %c0_1 = arith.constant 0 : index
    %c0_2 = arith.constant 0 : index
    %1 = vector.load %arg2[%c0_1, %c0_2] : memref<1x128xf32, #tpu.memory_space<vmem>>, vector<1x128xf32>
    %2 = vector.broadcast %1 : vector<1x128xf32> to vector<256x128xf32>
    %3 = arith.mulf %0, %2 : vector<256x128xf32>
    %c0_3 = arith.constant 0 : index
    %c0_4 = arith.constant 0 : index
    %4 = vector.load %arg3[%c0_3, %c0_4] : memref<1x128xf32, #tpu.memory_space<vmem>>, vector<1x128xf32>
    %5 = vector.broadcast %4 : vector<1x128xf32> to vector<256x128xf32>
    %6 = arith.addf %3, %5 : vector<256x128xf32>
    %cst = arith.constant 0.000000e+00 : f32
    %7 = vector.broadcast %cst : f32 to vector<256x128xf32>
    %8 = arith.maximumf %6, %7 : vector<256x128xf32>
    %9 = arith.truncf %8 : vector<256x128xf32> to vector<256x128xbf16>
    %c0_5 = arith.constant 0 : index
    %c0_6 = arith.constant 0 : index
    %10 = vector.load %arg4[%c0_5, %c0_6] : memref<256x128xbf16, #tpu.memory_space<vmem>>, vector<256x128xbf16>
    tpu.vector_store %arg4[%c0_5, %c0_6], %9 {strides = array<i32>} : memref<256x128xbf16, #tpu.memory_space<vmem>>, vector<256x128xbf16>,
    return
  }
  func.func @transform_0(%arg0: i32) -> (i32, i32) {
    %c0_i32 = arith.constant 0 : i32
    %c0_i32_0 = arith.constant 0 : i32
    return %arg0, %c0_i32 : i32, i32
  }
  func.func @transform_1(%arg0: i32) -> (i32, i32) {
    %c0_i32 = arith.constant 0 : i32
    %c0_i32_0 = arith.constant 0 : i32
    %c0_i32_1 = arith.constant 0 : i32
    return %c0_i32, %c0_i32_0 : i32, i32
  }
  func.func @transform_2(%arg0: i32) -> (i32, i32) {
    %c0_i32 = arith.constant 0 : i32
    %c0_i32_0 = arith.constant 0 : i32
    %c0_i32_1 = arith.constant 0 : i32
    return %c0_i32, %c0_i32_0 : i32, i32
  }
  func.func @transform_3(%arg0: i32) -> (i32, i32) {
    %c0_i32 = arith.constant 0 : i32
    %c0_i32_0 = arith.constant 0 : i32
    return %arg0, %c0_i32 : i32, i32
  }
}

module attributes {stable_mosaic.version = 11 : i64} {
  func.func @_conv2_ds_stats_kernel(%arg0: i32, %arg1: i32, %arg2: memref<256x72xbf16, #tpu.memory_space<vmem>>, %arg3: memref<72x128xbf16, #tpu.memory_space<vmem>>, %arg4: memref<256x8xbf16, #tpu.memory_space<vmem>>, %arg5: memref<8x128xbf16, #tpu.memory_space<vmem>>, %arg6: memref<256x128xf32, #tpu.memory_space<vmem>>, %arg7: memref<1x2x128xf32, #tpu.memory_space<vmem>>, %arg8: memref<1x2x128xf32, #tpu.memory_space<vmem>>) attributes {dimension_semantics = [#tpu.dimension_semantics<parallel>, #tpu.dimension_semantics<arbitrary>], iteration_bounds = array<i64: 2, 1>, scalar_prefetch = 0 : i64, scratch_operands = 0 : i64, tpu.core_type = #tpu.core_type<tc>, window_params = [{transform_indices = @transform_0, window_bounds = array<i64: 256, 72>}, {transform_indices = @transform_1, window_bounds = array<i64: 72, 128>}, {transform_indices = @transform_2, window_bounds = array<i64: 256, 8>}, {pipeline_mode = #tpu.pipeline_mode<synchronous>, transform_indices = @transform_3, window_bounds = array<i64: 8, 128>}, {transform_indices = @transform_4, window_bounds = array<i64: 256, 128>}, {transform_indices = @transform_5, window_bounds = array<i64: 1, 2, 128>}, {transform_indices = @transform_6, window_bounds = array<i64: 1, 2, 128>}]} {
    %c0_i32 = arith.constant 0 : i32
    %0 = arith.cmpi eq, %arg1, %c0_i32 : i32
    %1 = arith.extui %0 : i1 to i32
    %c0_i32_0 = arith.constant 0 : i32
    %2 = arith.cmpi ne, %1, %c0_i32_0 : i32
    scf.if %2 {
      %cst_10 = arith.constant 0.000000e+00 : f32
      %12 = vector.broadcast %cst_10 : f32 to vector<256x128xf32>
      %c0_11 = arith.constant 0 : index
      %c0_12 = arith.constant 0 : index
      %13 = vector.load %arg6[%c0_11, %c0_12] : memref<256x128xf32, #tpu.memory_space<vmem>>, vector<256x128xf32>
      tpu.vector_store %arg6[%c0_11, %c0_12], %12 {strides = array<i32>} : memref<256x128xf32, #tpu.memory_space<vmem>>, vector<256x128xf32>,
    } else {
    }
    %c0 = arith.constant 0 : index
    %c0_1 = arith.constant 0 : index
    %3 = vector.load %arg6[%c0, %c0_1] : memref<256x128xf32, #tpu.memory_space<vmem>>, vector<256x128xf32>
    %c0_2 = arith.constant 0 : index
    %c0_3 = arith.constant 0 : index
    %4 = vector.load %arg2[%c0_2, %c0_3] : memref<256x72xbf16, #tpu.memory_space<vmem>>, vector<256x72xbf16>
    %c0_4 = arith.constant 0 : index
    %c0_5 = arith.constant 0 : index
    %5 = vector.load %arg3[%c0_4, %c0_5] : memref<72x128xbf16, #tpu.memory_space<vmem>>, vector<72x128xbf16>
    %cst = arith.constant dense<0.000000e+00> : vector<256x128xf32>
    %6 = tpu.matmul %4, %5, %cst {dimension_numbers = #tpu.dot_dimension_numbers<[1], [0], [0], [1], [0, 0, 1, 1], [], []>} : vector<256x72xbf16>, vector<72x128xbf16>, vector<256x128xf32> -> vector<256x128xf32>
    %7 = arith.addf %3, %6 : vector<256x128xf32>
    %c0_6 = arith.constant 0 : index
    %c0_7 = arith.constant 0 : index
    %8 = vector.load %arg6[%c0_6, %c0_7] : memref<256x128xf32, #tpu.memory_space<vmem>>, vector<256x128xf32>
    tpu.vector_store %arg6[%c0_6, %c0_7], %7 {strides = array<i32>} : memref<256x128xf32, #tpu.memory_space<vmem>>, vector<256x128xf32>,
    %c0_i32_8 = arith.constant 0 : i32
    %9 = arith.cmpi eq, %arg1, %c0_i32_8 : i32
    %10 = arith.extui %9 : i1 to i32
    %c0_i32_9 = arith.constant 0 : i32
    %11 = arith.cmpi ne, %10, %c0_i32_9 : i32
    scf.if %11 {
      %c0_10 = arith.constant 0 : index
      %c0_11 = arith.constant 0 : index
      %12 = vector.load %arg6[%c0_10, %c0_11] : memref<256x128xf32, #tpu.memory_space<vmem>>, vector<256x128xf32>
      %cst_12 = arith.constant dense<0.000000e+00> : vector<128xf32>
      %13 = vector.multi_reduction <add>, %12, %cst_12 [0] : vector<256x128xf32> to vector<128xf32>
      %14 = vector.shape_cast %13 : vector<128xf32> to vector<1x128xf32>
      %c0_13 = arith.constant 0 : index
      %c0_14 = arith.constant 0 : index
      %c0_15 = arith.constant 0 : index
      %15 = vector.load %arg7[%c0_13, %c0_14, %c0_15] : memref<1x2x128xf32, #tpu.memory_space<vmem>>, vector<1x1x128xf32>
      %16 = vector.shape_cast %15 : vector<1x1x128xf32> to vector<1x128xf32>
      %17 = vector.shape_cast %14 : vector<1x128xf32> to vector<1x1x128xf32>
      tpu.vector_store %arg7[%c0_13, %c0_14, %c0_15], %17 {strides = array<i32>} : memref<1x2x128xf32, #tpu.memory_space<vmem>>, vector<1x1x128xf32>,
      %18 = arith.mulf %12, %12 : vector<256x128xf32>
      %cst_16 = arith.constant dense<0.000000e+00> : vector<128xf32>
      %19 = vector.multi_reduction <add>, %18, %cst_16 [0] : vector<256x128xf32> to vector<128xf32>
      %20 = vector.shape_cast %19 : vector<128xf32> to vector<1x128xf32>
      %c0_17 = arith.constant 0 : index
      %c1 = arith.constant 1 : index
      %c0_18 = arith.constant 0 : index
      %21 = vector.load %arg7[%c0_17, %c1, %c0_18] : memref<1x2x128xf32, #tpu.memory_space<vmem>>, vector<1x1x128xf32>
      %22 = vector.shape_cast %21 : vector<1x1x128xf32> to vector<1x128xf32>
      %23 = vector.shape_cast %20 : vector<1x128xf32> to vector<1x1x128xf32>
      tpu.vector_store %arg7[%c0_17, %c1, %c0_18], %23 {strides = array<i32>} : memref<1x2x128xf32, #tpu.memory_space<vmem>>, vector<1x1x128xf32>,
      %c0_19 = arith.constant 0 : index
      %c0_20 = arith.constant 0 : index
      %24 = vector.load %arg4[%c0_19, %c0_20] : memref<256x8xbf16, #tpu.memory_space<vmem>>, vector<256x8xbf16>
      %c0_21 = arith.constant 0 : index
      %c0_22 = arith.constant 0 : index
      %25 = vector.load %arg5[%c0_21, %c0_22] : memref<8x128xbf16, #tpu.memory_space<vmem>>, vector<8x128xbf16>
      %cst_23 = arith.constant dense<0.000000e+00> : vector<256x128xf32>
      %26 = tpu.matmul %24, %25, %cst_23 {dimension_numbers = #tpu.dot_dimension_numbers<[1], [0], [0], [1], [0, 0, 1, 1], [], []>} : vector<256x8xbf16>, vector<8x128xbf16>, vector<256x128xf32> -> vector<256x128xf32>
      %cst_24 = arith.constant dense<0.000000e+00> : vector<128xf32>
      %27 = vector.multi_reduction <add>, %26, %cst_24 [0] : vector<256x128xf32> to vector<128xf32>
      %28 = vector.shape_cast %27 : vector<128xf32> to vector<1x128xf32>
      %c0_25 = arith.constant 0 : index
      %c0_26 = arith.constant 0 : index
      %c0_27 = arith.constant 0 : index
      %29 = vector.load %arg8[%c0_25, %c0_26, %c0_27] : memref<1x2x128xf32, #tpu.memory_space<vmem>>, vector<1x1x128xf32>
      %30 = vector.shape_cast %29 : vector<1x1x128xf32> to vector<1x128xf32>
      %31 = vector.shape_cast %28 : vector<1x128xf32> to vector<1x1x128xf32>
      tpu.vector_store %arg8[%c0_25, %c0_26, %c0_27], %31 {strides = array<i32>} : memref<1x2x128xf32, #tpu.memory_space<vmem>>, vector<1x1x128xf32>,
      %32 = arith.mulf %26, %26 : vector<256x128xf32>
      %cst_28 = arith.constant dense<0.000000e+00> : vector<128xf32>
      %33 = vector.multi_reduction <add>, %32, %cst_28 [0] : vector<256x128xf32> to vector<128xf32>
      %34 = vector.shape_cast %33 : vector<128xf32> to vector<1x128xf32>
      %c0_29 = arith.constant 0 : index
      %c1_30 = arith.constant 1 : index
      %c0_31 = arith.constant 0 : index
      %35 = vector.load %arg8[%c0_29, %c1_30, %c0_31] : memref<1x2x128xf32, #tpu.memory_space<vmem>>, vector<1x1x128xf32>
      %36 = vector.shape_cast %35 : vector<1x1x128xf32> to vector<1x128xf32>
      %37 = vector.shape_cast %34 : vector<1x128xf32> to vector<1x1x128xf32>
      tpu.vector_store %arg8[%c0_29, %c1_30, %c0_31], %37 {strides = array<i32>} : memref<1x2x128xf32, #tpu.memory_space<vmem>>, vector<1x1x128xf32>,
    } else {
    }
    return
  }
  func.func @transform_0(%arg0: i32, %arg1: i32) -> (i32, i32) {
    %c0_i32 = arith.constant 0 : i32
    return %arg0, %arg1 : i32, i32
  }
  func.func @transform_1(%arg0: i32, %arg1: i32) -> (i32, i32) {
    %c0_i32 = arith.constant 0 : i32
    %c0_i32_0 = arith.constant 0 : i32
    return %arg1, %c0_i32 : i32, i32
  }
  func.func @transform_2(%arg0: i32, %arg1: i32) -> (i32, i32) {
    %c0_i32 = arith.constant 0 : i32
    %c0_i32_0 = arith.constant 0 : i32
    return %arg0, %c0_i32 : i32, i32
  }
  func.func @transform_3(%arg0: i32, %arg1: i32) -> (i32, i32) {
    %c0_i32 = arith.constant 0 : i32
    %c0_i32_0 = arith.constant 0 : i32
    %c0_i32_1 = arith.constant 0 : i32
    return %c0_i32, %c0_i32_0 : i32, i32
  }
  func.func @transform_4(%arg0: i32, %arg1: i32) -> (i32, i32) {
    %c0_i32 = arith.constant 0 : i32
    %c0_i32_0 = arith.constant 0 : i32
    return %arg0, %c0_i32 : i32, i32
  }
  func.func @transform_5(%arg0: i32, %arg1: i32) -> (i32, i32, i32) {
    %c0_i32 = arith.constant 0 : i32
    %c0_i32_0 = arith.constant 0 : i32
    %c0_i32_1 = arith.constant 0 : i32
    return %arg0, %c0_i32, %c0_i32_0 : i32, i32, i32
  }
  func.func @transform_6(%arg0: i32, %arg1: i32) -> (i32, i32, i32) {
    %c0_i32 = arith.constant 0 : i32
    %c0_i32_0 = arith.constant 0 : i32
    %c0_i32_1 = arith.constant 0 : i32
    return %arg0, %c0_i32, %c0_i32_0 : i32, i32, i32
  }
}

module attributes {stable_mosaic.version = 11 : i64} {
  func.func @_final_ds_kernel(%arg0: i32, %arg1: memref<256x128xf32, #tpu.memory_space<vmem>>, %arg2: memref<1x128xf32, #tpu.memory_space<vmem>>, %arg3: memref<1x128xf32, #tpu.memory_space<vmem>>, %arg4: memref<256x8xbf16, #tpu.memory_space<vmem>>, %arg5: memref<8x128xbf16, #tpu.memory_space<vmem>>, %arg6: memref<1x128xf32, #tpu.memory_space<vmem>>, %arg7: memref<1x128xf32, #tpu.memory_space<vmem>>, %arg8: memref<256x128xf32, #tpu.memory_space<vmem>>) attributes {dimension_semantics = [#tpu.dimension_semantics<parallel>], iteration_bounds = array<i64: 2>, scalar_prefetch = 0 : i64, scratch_operands = 0 : i64, tpu.core_type = #tpu.core_type<tc>, window_params = [{transform_indices = @transform_0, window_bounds = array<i64: 256, 128>}, {pipeline_mode = #tpu.pipeline_mode<synchronous>, transform_indices = @transform_1, window_bounds = array<i64: 1, 128>}, {pipeline_mode = #tpu.pipeline_mode<synchronous>, transform_indices = @transform_2, window_bounds = array<i64: 1, 128>}, {transform_indices = @transform_3, window_bounds = array<i64: 256, 8>}, {pipeline_mode = #tpu.pipeline_mode<synchronous>, transform_indices = @transform_4, window_bounds = array<i64: 8, 128>}, {pipeline_mode = #tpu.pipeline_mode<synchronous>, transform_indices = @transform_5, window_bounds = array<i64: 1, 128>}, {pipeline_mode = #tpu.pipeline_mode<synchronous>, transform_indices = @transform_6, window_bounds = array<i64: 1, 128>}, {transform_indices = @transform_7, window_bounds = array<i64: 256, 128>}]} {
    %c0 = arith.constant 0 : index
    %c0_0 = arith.constant 0 : index
    %0 = vector.load %arg1[%c0, %c0_0] : memref<256x128xf32, #tpu.memory_space<vmem>>, vector<256x128xf32>
    %c0_1 = arith.constant 0 : index
    %c0_2 = arith.constant 0 : index
    %1 = vector.load %arg2[%c0_1, %c0_2] : memref<1x128xf32, #tpu.memory_space<vmem>>, vector<1x128xf32>
    %2 = vector.broadcast %1 : vector<1x128xf32> to vector<256x128xf32>
    %3 = arith.mulf %0, %2 : vector<256x128xf32>
    %c0_3 = arith.constant 0 : index
    %c0_4 = arith.constant 0 : index
    %4 = vector.load %arg3[%c0_3, %c0_4] : memref<1x128xf32, #tpu.memory_space<vmem>>, vector<1x128xf32>
    %5 = vector.broadcast %4 : vector<1x128xf32> to vector<256x128xf32>
    %6 = arith.addf %3, %5 : vector<256x128xf32>
    %c0_5 = arith.constant 0 : index
    %c0_6 = arith.constant 0 : index
    %7 = vector.load %arg4[%c0_5, %c0_6] : memref<256x8xbf16, #tpu.memory_space<vmem>>, vector<256x8xbf16>
    %c0_7 = arith.constant 0 : index
    %c0_8 = arith.constant 0 : index
    %8 = vector.load %arg5[%c0_7, %c0_8] : memref<8x128xbf16, #tpu.memory_space<vmem>>, vector<8x128xbf16>
    %cst = arith.constant dense<0.000000e+00> : vector<256x128xf32>
    %9 = tpu.matmul %7, %8, %cst {dimension_numbers = #tpu.dot_dimension_numbers<[1], [0], [0], [1], [0, 0, 1, 1], [], []>} : vector<256x8xbf16>, vector<8x128xbf16>, vector<256x128xf32> -> vector<256x128xf32>
    %c0_9 = arith.constant 0 : index
    %c0_10 = arith.constant 0 : index
    %10 = vector.load %arg6[%c0_9, %c0_10] : memref<1x128xf32, #tpu.memory_space<vmem>>, vector<1x128xf32>
    %11 = vector.broadcast %10 : vector<1x128xf32> to vector<256x128xf32>
    %12 = arith.mulf %9, %11 : vector<256x128xf32>
    %c0_11 = arith.constant 0 : index
    %c0_12 = arith.constant 0 : index
    %13 = vector.load %arg7[%c0_11, %c0_12] : memref<1x128xf32, #tpu.memory_space<vmem>>, vector<1x128xf32>
    %14 = vector.broadcast %13 : vector<1x128xf32> to vector<256x128xf32>
    %15 = arith.addf %12, %14 : vector<256x128xf32>
    %16 = arith.addf %6, %15 : vector<256x128xf32>
    %cst_13 = arith.constant 0.000000e+00 : f32
    %17 = vector.broadcast %cst_13 : f32 to vector<256x128xf32>
    %18 = arith.maximumf %16, %17 : vector<256x128xf32>
    %c0_14 = arith.constant 0 : index
    %c0_15 = arith.constant 0 : index
    %19 = vector.load %arg8[%c0_14, %c0_15] : memref<256x128xf32, #tpu.memory_space<vmem>>, vector<256x128xf32>
    tpu.vector_store %arg8[%c0_14, %c0_15], %18 {strides = array<i32>} : memref<256x128xf32, #tpu.memory_space<vmem>>, vector<256x128xf32>,
    return
  }
  func.func @transform_0(%arg0: i32) -> (i32, i32) {
    %c0_i32 = arith.constant 0 : i32
    %c0_i32_0 = arith.constant 0 : i32
    return %arg0, %c0_i32 : i32, i32
  }
  func.func @transform_1(%arg0: i32) -> (i32, i32) {
    %c0_i32 = arith.constant 0 : i32
    %c0_i32_0 = arith.constant 0 : i32
    %c0_i32_1 = arith.constant 0 : i32
    return %c0_i32, %c0_i32_0 : i32, i32
  }
  func.func @transform_2(%arg0: i32) -> (i32, i32) {
    %c0_i32 = arith.constant 0 : i32
    %c0_i32_0 = arith.constant 0 : i32
    %c0_i32_1 = arith.constant 0 : i32
    return %c0_i32, %c0_i32_0 : i32, i32
  }
  func.func @transform_3(%arg0: i32) -> (i32, i32) {
    %c0_i32 = arith.constant 0 : i32
    %c0_i32_0 = arith.constant 0 : i32
    return %arg0, %c0_i32 : i32, i32
  }
  func.func @transform_4(%arg0: i32) -> (i32, i32) {
    %c0_i32 = arith.constant 0 : i32
    %c0_i32_0 = arith.constant 0 : i32
    %c0_i32_1 = arith.constant 0 : i32
    return %c0_i32, %c0_i32_0 : i32, i32
  }
  func.func @transform_5(%arg0: i32) -> (i32, i32) {
    %c0_i32 = arith.constant 0 : i32
    %c0_i32_0 = arith.constant 0 : i32
    %c0_i32_1 = arith.constant 0 : i32
    return %c0_i32, %c0_i32_0 : i32, i32
  }
  func.func @transform_6(%arg0: i32) -> (i32, i32) {
    %c0_i32 = arith.constant 0 : i32
    %c0_i32_0 = arith.constant 0 : i32
    %c0_i32_1 = arith.constant 0 : i32
    return %c0_i32, %c0_i32_0 : i32, i32
  }
  func.func @transform_7(%arg0: i32) -> (i32, i32) {
    %c0_i32 = arith.constant 0 : i32
    %c0_i32_0 = arith.constant 0 : i32
    return %arg0, %c0_i32 : i32, i32
  }
}

</mosaic_0001>

<bundles_post_ra>
// kernel: skip_connection_block.5
= control target key start
LH: loop header
LB: loop body
LE: loop exit
PB: predicated region body
PF: predicated region fallthrough
CT: control target
= control target key end

     0   :  { %s574_s12 = smov 0   ;;  %s721_s0 = inlined_call_operand.vmem [shape: f32[512,128], index: 0, kind: input, shape index: {}]   ;;  %s722_s1 = inlined_call_operand.vmem [shape: f32[1,128], index: 1, kind: input, shape index: {}]   ;;  %s723_s2 = inlined_call_operand.vmem [shape: f32[1,128], index: 2, kind: input, shape index: {}]   ;;  %s724_s3 = inlined_call_operand.vmem [shape: bf16[512,128], index: 3, kind: output, shape index: {}]  }
   0x1 LB: > { %s430_s13 = sadd.s32 4294967295, %s552_s12   ;;  %p434_p0 = scmp.ge.s32.totalorder %s552_s12, 1  ;;  %s552_s12 = sphi %s574_s12, %s13_s12  }
   0x2   : > { %p138_p1 = scmp.lt.s32.totalorder %s552_s12, 3 }
   0x4   : > { %p139_p2 = pnand %p434_p0, %p138_p1 }
   0x5   : > { %s435_s14 = sshll.u32 (!%p139_p2), %s430_s13, 5 }
   0x6   : > { %142 = sbr.rel (%p139_p2) target bundleno = 49 (0x31), region = 32  ;;  %p163_p3 = scmp.lt.s32.totalorder (!%p139_p2), %s435_s14, 63 }
   0xb   : > { %s726_s14 = smov (!%p163_p3, %s435_s14), 63  ;;  %v587_v0 = vld [vmem:[%s722_s1] ss:$0 sm:$0xff] }
   0xc   : > { %s436_s17 = sshll.u32 %s726_s14, 3  ;;  %v598_v1 = vld [vmem:[%s723_s2] ss:$0 sm:$0xff]  ;;  %s438_s23 = sshll.u32 %s726_s14, 2 }
   0xd   : > { %s593_s20 = scalar_lea.vmem %s721_s0, %s436_s17  ;;  %s630_s26 = scalar_lea.vmem %s724_s3, %s438_s23 }
   0xe   : > { %v174_v2 = vld [vmem:[%s593_s20] sm:$0xff]  ;;  %v175_v3 = vld [vmem:[%s593_s20 + $0x8] sm:$0xff]  ;;  %v176_v4 = vld [vmem:[%s593_s20 + $0x10] sm:$0xff] }
   0xf   : > { %v210_v5 = vmul.f32 %v587_v0, %v174_v2  ;;  %v211_v6 = vmul.f32 %v587_v0, %v175_v3  ;;  %v177_v7 = vld [vmem:[%s593_s20 + $0x18] sm:$0xff]  ;;  %v212_v8 = vmul.f32 %v587_v0, %v176_v4  ;;  %v178_v9 = vld [vmem:[%s593_s20 + $0x20] sm:$0xff]  ;;  %v179_v10 = vld [vmem:[%s593_s20 + $0x28] sm:$0xff] }
  0x10   : > { %v213_v11 = vmul.f32 %v587_v0, %v177_v7  ;;  %v214_v12 = vmul.f32 %v587_v0, %v178_v9  ;;  %v215_v13 = vmul.f32 %v587_v0, %v179_v10  ;;  %v180_v14 = vld [vmem:[%s593_s20 + $0x30] sm:$0xff]  ;;  %v181_v15 = vld [vmem:[%s593_s20 + $0x38] sm:$0xff]  ;;  %v182_v24 = vld [vmem:[%s593_s20 + $0x40] sm:$0xff] }
  0x11   : > { %v246_v16 = vadd.f32 %v598_v1, %v210_v5  ;;  %v247_v17 = vadd.f32 %v598_v1, %v211_v6  ;;  %v248_v18 = vadd.f32 %v598_v1, %v212_v8  ;;  %v216_v19 = vmul.f32 %v587_v0, %v180_v14  ;;  %v183_v25 = vld [vmem:[%s593_s20 + $0x48] sm:$0xff]  ;;  %v184_v30 = vld [vmem:[%s593_s20 + $0x50] sm:$0xff]  ;;  %v185_v35 = vld [vmem:[%s593_s20 + $0x58] sm:$0xff] }
  0x12   : > { %v249_v20 = vadd.f32 %v598_v1, %v213_v11  ;;  %v250_v21 = vadd.f32 %v598_v1, %v214_v12  ;;  %v251_v22 = vadd.f32 %v598_v1, %v215_v13  ;;  %v217_v23 = vmul.f32 %v587_v0, %v181_v15  ;;  %v186_v36 = vld [vmem:[%s593_s20 + $0x60] sm:$0xff]  ;;  %v187_v41 = vld [vmem:[%s593_s20 + $0x68] sm:$0xff]  ;;  %v188_v42 = vld [vmem:[%s593_s20 + $0x70] sm:$0xff] }
  0x13   : > { %v278_v26 = vmax.f32 %v246_v16, 0.0  ;;  %v279_v27 = vmax.f32 %v247_v17, 0.0  ;;  %v280_v28 = vmax.f32 %v248_v18, 0.0  ;;  %v252_v29 = vadd.f32 %v598_v1, %v216_v19  ;;  %v189_v51 = vld [vmem:[%s593_s20 + $0x78] sm:$0xff]  ;;  %v190_v56 = vld [vmem:[%s593_s20 + $0x80] sm:$0xff]  ;;  %v191_v61 = vld [vmem:[%s593_s20 + $0x88] sm:$0xff] }
  0x14   : > { %v281_v31 = vmax.f32 %v249_v20, 0.0  ;;  %v282_v32 = vmax.f32 %v250_v21, 0.0  ;;  %v283_v33 = vmax.f32 %v251_v22, 0.0  ;;  %v253_v34 = vadd.f32 %v598_v1, %v217_v23  ;;  %v192_v4 = vld [vmem:[%s593_s20 + $0x90] sm:$0xff]  ;;  %v193_v5 = vld [vmem:[%s593_s20 + $0x98] sm:$0xff]  ;;  %v194_v10 = vld [vmem:[%s593_s20 + $0xa0] sm:$0xff] }
  0x15   : > { %v444_v37 = vpack.c.bf16 %v279_v27, %v278_v26  ;;  %v284_v38 = vmax.f32 %v252_v29, 0.0  ;;  %v218_v39 = vmul.f32 %v587_v0, %v182_v24  ;;  %v219_v40 = vmul.f32 %v587_v0, %v183_v25  ;;  %v195_v15 = vld [vmem:[%s593_s20 + $0xa8] sm:$0xff]  ;;  %v196_v20 = vld [vmem:[%s593_s20 + $0xb0] sm:$0xff]  ;;  %v197_v25 = vld [vmem:[%s593_s20 + $0xb8] sm:$0xff] }
  0x16   : > { %v449_v43 = vpack.c.bf16 %v281_v31, %v280_v28  ;;  %v454_v44 = vpack.c.bf16 %v283_v33, %v282_v32  ;;  %v285_v45 = vmax.f32 %v253_v34, 0.0  ;;  %v220_v46 = vmul.f32 %v587_v0, %v184_v30  ;;  %v198_v30 = vld [vmem:[%s593_s20 + $0xc0] sm:$0xff] }
  0x17   : > { %445 = vst [vmem:[%s630_s26] sm:$0xff] %v444_v37   ;;  %v254_v47 = vadd.f32 %v598_v1, %v218_v39  ;;  %v255_v48 = vadd.f32 %v598_v1, %v219_v40  ;;  %v221_v49 = vmul.f32 %v587_v0, %v185_v35  ;;  %v222_v50 = vmul.f32 %v587_v0, %v186_v36  ;;  %v199_v35 = vld [vmem:[%s593_s20 + $0xc8] sm:$0xff]  ;;  %v200_v40 = vld [vmem:[%s593_s20 + $0xd0] sm:$0xff] }
  0x18   : > { %521 = vst [vmem:[%s630_s26 + $0x8] sm:$0xff] %v449_v43   ;;  %v459_v52 = vpack.c.bf16 %v285_v45, %v284_v38  ;;  %v256_v53 = vadd.f32 %v598_v1, %v220_v46  ;;  %v223_v54 = vmul.f32 %v587_v0, %v187_v41  ;;  %v224_v55 = vmul.f32 %v587_v0, %v188_v42  ;;  %v201_v41 = vld [vmem:[%s593_s20 + $0xd8] sm:$0xff]  ;;  %v202_v46 = vld [vmem:[%s593_s20 + $0xe0] sm:$0xff] }
  0x19   : > { %522 = vst [vmem:[%s630_s26 + $0x10] sm:$0xff] %v454_v44   ;;  %v286_v57 = vmax.f32 %v254_v47, 0.0  ;;  %v287_v58 = vmax.f32 %v255_v48, 0.0  ;;  %v257_v59 = vadd.f32 %v598_v1, %v221_v49  ;;  %v258_v60 = vadd.f32 %v598_v1, %v222_v50 }
  0x1a   : > { %523 = vst [vmem:[%s630_s26 + $0x18] sm:$0xff] %v459_v52   ;;  %v288_v62 = vmax.f32 %v256_v53, 0.0  ;;  %v259_v63 = vadd.f32 %v598_v1, %v223_v54  ;;  %v225_v2 = vmul.f32 %v587_v0, %v189_v51  ;;  %v260_v3 = vadd.f32 %v598_v1, %v224_v55  ;;  %v203_v51 = vld [vmem:[%s593_s20 + $0xe8] sm:$0xff] }
  0x1b   : > { %v464_v6 = vpack.c.bf16 %v287_v58, %v286_v57  ;;  %v289_v7 = vmax.f32 %v257_v59, 0.0  ;;  %v290_v8 = vmax.f32 %v258_v60, 0.0  ;;  %v226_v9 = vmul.f32 %v587_v0, %v190_v56  ;;  %v204_v56 = vld [vmem:[%s593_s20 + $0xf0] sm:$0xff] }
  0x1c   : > { %v291_v11 = vmax.f32 %v259_v63, 0.0  ;;  %v261_v12 = vadd.f32 %v598_v1, %v225_v2  ;;  %v292_v13 = vmax.f32 %v260_v3, 0.0  ;;  %v227_v14 = vmul.f32 %v587_v0, %v191_v61  ;;  %v205_v61 = vld [vmem:[%s593_s20 + $0xf8] sm:$0xff] }
  0x1d   : > { %524 = vst [vmem:[%s630_s26 + $0x20] sm:$0xff] %v464_v6   ;;  %v469_v16 = vpack.c.bf16 %v289_v7, %v288_v62  ;;  %v262_v17 = vadd.f32 %v598_v1, %v226_v9  ;;  %v228_v18 = vmul.f32 %v587_v0, %v192_v4  ;;  %v229_v19 = vmul.f32 %v587_v0, %v193_v5 }
  0x1e   : > { %v474_v21 = vpack.c.bf16 %v291_v11, %v290_v8  ;;  %v293_v22 = vmax.f32 %v261_v12, 0.0  ;;  %v263_v23 = vadd.f32 %v598_v1, %v227_v14  ;;  %v230_v24 = vmul.f32 %v587_v0, %v194_v10 }
  0x1f   : > { %525 = vst [vmem:[%s630_s26 + $0x28] sm:$0xff] %v469_v16   ;;  %v294_v26 = vmax.f32 %v262_v17, 0.0  ;;  %v264_v27 = vadd.f32 %v598_v1, %v228_v18  ;;  %v265_v28 = vadd.f32 %v598_v1, %v229_v19  ;;  %v231_v29 = vmul.f32 %v587_v0, %v195_v15 }
  0x20   : > { %526 = vst [vmem:[%s630_s26 + $0x30] sm:$0xff] %v474_v21   ;;  %v479_v31 = vpack.c.bf16 %v293_v22, %v292_v13  ;;  %v295_v32 = vmax.f32 %v263_v23, 0.0  ;;  %v266_v33 = vadd.f32 %v598_v1, %v230_v24  ;;  %v232_v34 = vmul.f32 %v587_v0, %v196_v20 }
  0x21   : > { %v296_v36 = vmax.f32 %v264_v27, 0.0  ;;  %v297_v37 = vmax.f32 %v265_v28, 0.0  ;;  %v267_v38 = vadd.f32 %v598_v1, %v231_v29  ;;  %v233_v39 = vmul.f32 %v587_v0, %v197_v25 }
  0x22   : > { %527 = vst [vmem:[%s630_s26 + $0x38] sm:$0xff] %v479_v31   ;;  %v484_v42 = vpack.c.bf16 %v295_v32, %v294_v26  ;;  %v298_v43 = vmax.f32 %v266_v33, 0.0  ;;  %v268_v44 = vadd.f32 %v598_v1, %v232_v34  ;;  %v234_v45 = vmul.f32 %v587_v0, %v198_v30 }
  0x23   : > { %v489_v47 = vpack.c.bf16 %v297_v37, %v296_v36  ;;  %v299_v48 = vmax.f32 %v267_v38, 0.0  ;;  %v269_v49 = vadd.f32 %v598_v1, %v233_v39  ;;  %v235_v50 = vmul.f32 %v587_v0, %v199_v35 }
  0x24   : > { %528 = vst [vmem:[%s630_s26 + $0x40] sm:$0xff] %v484_v42   ;;  %v300_v52 = vmax.f32 %v268_v44, 0.0  ;;  %v270_v53 = vadd.f32 %v598_v1, %v234_v45  ;;  %v236_v54 = vmul.f32 %v587_v0, %v200_v40  ;;  %v237_v55 = vmul.f32 %v587_v0, %v201_v41 }
  0x25   : > { %529 = vst [vmem:[%s630_s26 + $0x48] sm:$0xff] %v489_v47   ;;  %v494_v57 = vpack.c.bf16 %v299_v48, %v298_v43  ;;  %v301_v58 = vmax.f32 %v269_v49, 0.0  ;;  %v271_v59 = vadd.f32 %v598_v1, %v235_v50  ;;  %v238_v60 = vmul.f32 %v587_v0, %v202_v46 }
  0x26   : > { %v302_v62 = vmax.f32 %v270_v53, 0.0  ;;  %v272_v63 = vadd.f32 %v598_v1, %v236_v54  ;;  %v273_v2 = vadd.f32 %v598_v1, %v237_v55  ;;  %v239_v3 = vmul.f32 %v587_v0, %v203_v51 }
  0x27   : > { %530 = vst [vmem:[%s630_s26 + $0x50] sm:$0xff] %v494_v57   ;;  %v499_v4 = vpack.c.bf16 %v301_v58, %v300_v52  ;;  %v303_v5 = vmax.f32 %v271_v59, 0.0  ;;  %v274_v6 = vadd.f32 %v598_v1, %v238_v60  ;;  %v240_v7 = vmul.f32 %v587_v0, %v204_v56 }
  0x28   : > { %v304_v8 = vmax.f32 %v272_v63, 0.0  ;;  %v305_v9 = vmax.f32 %v273_v2, 0.0  ;;  %v275_v10 = vadd.f32 %v598_v1, %v239_v3  ;;  %v241_v11 = vmul.f32 %v587_v0, %v205_v61 }
  0x29   : > { %531 = vst [vmem:[%s630_s26 + $0x58] sm:$0xff] %v499_v4   ;;  %v504_v12 = vpack.c.bf16 %v303_v5, %v302_v62  ;;  %v306_v13 = vmax.f32 %v274_v6, 0.0  ;;  %v276_v14 = vadd.f32 %v598_v1, %v240_v7 }
  0x2a   : > { %v509_v15 = vpack.c.bf16 %v305_v9, %v304_v8  ;;  %v307_v16 = vmax.f32 %v275_v10, 0.0  ;;  %v277_v17 = vadd.f32 %v598_v1, %v241_v11 }
  0x2b   : > { %532 = vst [vmem:[%s630_s26 + $0x60] sm:$0xff] %v504_v12   ;;  %v308_v18 = vmax.f32 %v276_v14, 0.0 }
  0x2c   : > { %533 = vst [vmem:[%s630_s26 + $0x68] sm:$0xff] %v509_v15   ;;  %v514_v19 = vpack.c.bf16 %v307_v16, %v306_v13  ;;  %v309_v20 = vmax.f32 %v277_v17, 0.0 }
  0x2e   : > { %534 = vst [vmem:[%s630_s26 + $0x70] sm:$0xff] %v514_v19   ;;  %v519_v21 = vpack.c.bf16 %v309_v20, %v308_v18 }
  0x30   : > { %535 = vst [vmem:[%s630_s26 + $0x78] sm:$0xff] %v519_v21  }
  0x31 PF: > { %s13_s12 = sadd.s32 1, %s552_s12  }
  0x32   : > { %p10_p4 = scmp.ge.s32.totalorder %s13_s12, 4  }
  0x34   :  { %12 = sbr.rel (!%p10_p4) target bundleno = 1 (0x1), region = 62 }

// kernel: skip_connection_block.4
= control target key start
LH: loop header
LB: loop body
LE: loop exit
PB: predicated region body
PF: predicated region fallthrough
CT: control target
= control target key end

     0   :  { %s1091_s12 = smov 0   ;;  %s1093_s13 = smov 0   ;;  %s1333_s0 = inlined_call_operand.vmem [shape: bf16[512,40], index: 0, kind: input, shape index: {}]   ;;  %s1334_s1 = inlined_call_operand.vmem [shape: bf16[40,128], index: 1, kind: input, shape index: {}]   ;;  %s1335_s2 = inlined_call_operand.vmem [shape: f32[512,128], index: 2, kind: output, shape index: {0}]   ;;  %s1336_s3 = inlined_call_operand.vmem [shape: f32[2,2,128], index: 3, kind: output, shape index: {1}]  }
   0x1   :  { %s1095_s14 = smov 0  }
   0x2 LB: > { %s26_s15 = sadd.s32 1, %s1065_s13  ;;  %p899_p0 = scmp.ge.s32.totalorder %s1069_s14, 1  ;;  %s1069_s14 = sphi %s1095_s14, %s14_s14   ;;  %s1065_s13 = sphi %s1093_s13, %s1338_s13   ;;  %s1061_s12 = sphi %s1091_s12, %s1337_s12  }
   0x3   : > { %p28_p1 = scmp.ge.s32.totalorder %s26_s15, 2  ;;  %p169_p2 = scmp.lt.s32.totalorder %s1069_s14, 3 }
   0x5   : > { %s1340_s15 = smov (%p28_p1, %s26_s15), 0  ;;  %p170_p3 = pnand %p899_p0, %p169_p2 }
   0x6   : > { %s900_s18 = sshll.u32 (!%p170_p3), %s1061_s12, 5  ;;  %p226_p5 = scmp.lt.s32.totalorder (!%p170_p3), %s1061_s12, 1 }
   0x7   : > { %173 = sbr.rel (%p170_p3) target bundleno = 276 (0x114), region = 28  ;;  %p206_p4 = scmp.lt.s32.totalorder (!%p170_p3), %s900_s18, 63 }
   0xc   : > { %v335_v0 = vld [vmem:[%s1334_s1 + $0x10] sm:$0xf]  ;;  %vm480_vm0 = vcmask 1043456   ;;  %s1342_s18 = smov (!%p206_p4, %s900_s18), 63  ;;  %v1012_v4 = vld [vmem:[%s1334_s1 + $0x8] sm:$0xff]  ;;  %v1011_v5 = vld [vmem:[%s1334_s1] sm:$0xff] }
   0xd   : > { %v425_v1 = vunpack.c.l.b16 %v335_v0  ;;  %s901_s21 = sshll.u32 %s1342_s18, 2  ;;  %vm431_vm1 = vcmask 326656   ;;  %s903_s27 = sshll.u32 %s1342_s18, 3 }
   0xe   : > { %s1127_s26 = scalar_lea.vmem %s1333_s0, %s901_s21  ;;  %s1165_s30 = scalar_lea.vmem %s1335_s2, %s903_s27 }
   0xf   : > { %v428_v2 = vpack.c.b16 %v425_v1, %v425_v1  ;;  %v995_v6 = vld [vmem:[%s1127_s26] sm:$0xff]  ;;  %v996_v10 = vld [vmem:[%s1127_s26 + $0x8] sm:$0xff]  ;;  %v997_v14 = vld [vmem:[%s1127_s26 + $0x10] sm:$0xff]  ;;  %s1344_s12 = smov (!%p226_p5, %s1061_s12), 1 }
  0x10   : > { %v999_v7 = vld [vmem:[%s1127_s26 + $0x20] sm:$0xff]  ;;  %v1000_v11 = vld [vmem:[%s1127_s26 + $0x28] sm:$0xff]  ;;  %v1001_v15 = vld [vmem:[%s1127_s26 + $0x30] sm:$0xff]  ;;  %s904_s4 = sshll.u32 %s1344_s12, 1 }
  0x11   : > { %v482_v3 = vsel %vm480_vm0, %v428_v2, 0  ;;  %v1003_v8 = vld [vmem:[%s1127_s26 + $0x40] sm:$0xff]  ;;  %v1004_v12 = vld [vmem:[%s1127_s26 + $0x48] sm:$0xff]  ;;  %v1005_v16 = vld [vmem:[%s1127_s26 + $0x50] sm:$0xff]  ;;  %s229_s7 = scalar_lea.vmem %s1336_s3, %s904_s4 }
  0x12   : > { %489 = vmatpush.bf16.msra.mxu0 %v482_v3  ;;  %1013 = vmatpush.bf16.msra.mxu1 %v482_v3  ;;  %v1007_v9 = vld [vmem:[%s1127_s26 + $0x60] sm:$0xff]  ;;  %v1008_v13 = vld [vmem:[%s1127_s26 + $0x68] sm:$0xff]  ;;  %v1009_v17 = vld [vmem:[%s1127_s26 + $0x70] sm:$0xff] }
  0x13   : > { %1014 = vmatpush.bf16.msra.mxu2 %v482_v3  ;;  %1015 = vmatpush.bf16.msra.mxu3 %v482_v3  ;;  %v998_v18 = vld [vmem:[%s1127_s26 + $0x18] sm:$0xff] }
  0x14   : > { %v1002_v19 = vld [vmem:[%s1127_s26 + $0x38] sm:$0xff] }
  0x15   : > { %v1006_v20 = vld [vmem:[%s1127_s26 + $0x58] sm:$0xff] }
  0x16   : > { %490 = vmatpush.bf16.msra.mxu0 %v1012_v4  ;;  %1016 = vmatpush.bf16.msra.mxu1 %v1012_v4  ;;  %v1010_v21 = vld [vmem:[%s1127_s26 + $0x78] sm:$0xff] }
  0x17   : > { %1017 = vmatpush.bf16.msra.mxu2 %v1012_v4  ;;  %1018 = vmatpush.bf16.msra.mxu3 %v1012_v4 }
  0x1a   : > { %491 = vmatpush.bf16.msra.mxu0 %v1011_v5  ;;  %1019 = vmatpush.bf16.msra.mxu1 %v1011_v5 }
  0x1b   : > { %1020 = vmatpush.bf16.msra.mxu2 %v1011_v5  ;;  %1021 = vmatpush.bf16.msra.mxu3 %v1011_v5 }
  0x1d   : > { %977 = vmatmul.msk.bf16.vlgmr.msra.gmra.mxu0 %vm431_vm1, %v995_v6  ;;  %981 = vmatmul.msk.bf16.vlgmr.msra.gmra.mxu1 %vm431_vm1, %v999_v7 }
  0x1e   : > { %985 = vmatmul.msk.bf16.vlgmr.msra.gmra.mxu2 %vm431_vm1, %v1003_v8  ;;  %989 = vmatmul.msk.bf16.vlgmr.msra.gmra.mxu3 %vm431_vm1, %v1007_v9 }
  0x2d   : > { %978 = vmatmul.msk.bf16.gmra.mxu0 %vm431_vm1, %v996_v10  ;;  %982 = vmatmul.msk.bf16.gmra.mxu1 %vm431_vm1, %v1000_v11 }
  0x2e   : > { %986 = vmatmul.msk.bf16.gmra.mxu2 %vm431_vm1, %v1004_v12  ;;  %990 = vmatmul.msk.bf16.gmra.mxu3 %vm431_vm1, %v1008_v13 }
  0x3d   : > { %979 = vmatmul.msk.bf16.gmra.mxu0 %vm431_vm1, %v997_v14  ;;  %983 = vmatmul.msk.bf16.gmra.mxu1 %vm431_vm1, %v1001_v15 }
  0x3e   : > { %987 = vmatmul.msk.bf16.gmra.mxu2 %vm431_vm1, %v1005_v16  ;;  %991 = vmatmul.msk.bf16.gmra.mxu3 %vm431_vm1, %v1009_v17 }
  0x4d   : > { %980 = vmatmul.msk.bf16.gmra.mxu0 %vm431_vm1, %v998_v18  ;;  %984 = vmatmul.msk.bf16.gmra.mxu1 %vm431_vm1, %v1002_v19 }
  0x4e   : > { %988 = vmatmul.msk.bf16.gmra.mxu2 %vm431_vm1, %v1006_v20  ;;  %992 = vmatmul.msk.bf16.gmra.mxu3 %vm431_vm1, %v1010_v21 }
  0x9a   : > { %v493_v22 = vpop.f32.mrf.mxu0  ;;  %v1167_v23 = vpop.f32.mrf.mxu1 }
  0x9b   : > { %605 = vst [vmem:[%s1165_s30] sm:$0xff] %v493_v22  ;;  %v710_v45 = vmul.f32 %v493_v22, %v493_v22  ;;  %v718_v9 = vmul.f32 %v1167_v23, %v1167_v23 }
  0x9c   : > { %613 = vst [vmem:[%s1165_s30 + $0x40] sm:$0xff] %v1167_v23 }
  0xa1   : > { %v1172_v24 = vpop.f32.mrf.mxu2  ;;  %v1176_v27 = vpop.f32.mrf.mxu3 }
  0xa2   : > { %v495_v25 = vpop.f32.mrf.mxu0  ;;  %v1174_v26 = vpop.f32.mrf.mxu1  ;;  %621 = vst [vmem:[%s1165_s30 + $0x80] sm:$0xff] %v1172_v24 }
  0xa3   : > { %606 = vst [vmem:[%s1165_s30 + $0x8] sm:$0xff] %v495_v25  ;;  %v711_v44 = vmul.f32 %v495_v25, %v495_v25  ;;  %v672_v46 = vadd.f32 %v495_v25, %v493_v22  ;;  %v719_v12 = vmul.f32 %v1174_v26, %v1174_v26 }
  0xa4   : > { %614 = vst [vmem:[%s1165_s30 + $0x48] sm:$0xff] %v1174_v26 }
  0xa5   : > { %629 = vst [vmem:[%s1165_s30 + $0xc0] sm:$0xff] %v1176_v27  ;;  %v742_v49 = vadd.f32 %v711_v44, %v710_v45 }
  0xa9   : > { %v1183_v28 = vpop.f32.mrf.mxu2  ;;  %v1189_v31 = vpop.f32.mrf.mxu3 }
  0xaa   : > { %v498_v29 = vpop.f32.mrf.mxu0  ;;  %v1187_v30 = vpop.f32.mrf.mxu1  ;;  %622 = vst [vmem:[%s1165_s30 + $0x88] sm:$0xff] %v1183_v28 }
  0xab   : > { %607 = vst [vmem:[%s1165_s30 + $0x10] sm:$0xff] %v498_v29  ;;  %v712_v47 = vmul.f32 %v498_v29, %v498_v29  ;;  %v673_v50 = vadd.f32 %v672_v46, %v498_v29  ;;  %v720_v16 = vmul.f32 %v1187_v30, %v1187_v30 }
  0xac   : > { %615 = vst [vmem:[%s1165_s30 + $0x50] sm:$0xff] %v1187_v30 }
  0xad   : > { %630 = vst [vmem:[%s1165_s30 + $0xc8] sm:$0xff] %v1189_v31  ;;  %v743_v55 = vadd.f32 %v742_v49, %v712_v47  ;;  %v726_v47 = vmul.f32 %v1172_v24, %v1172_v24 }
  0xb1   : > { %v1198_v32 = vpop.f32.mrf.mxu2  ;;  %v1202_v35 = vpop.f32.mrf.mxu3 }
  0xb2   : > { %v500_v33 = vpop.f32.mrf.mxu0  ;;  %v1200_v34 = vpop.f32.mrf.mxu1  ;;  %623 = vst [vmem:[%s1165_s30 + $0x90] sm:$0xff] %v1198_v32 }
  0xb3   : > { %608 = vst [vmem:[%s1165_s30 + $0x18] sm:$0xff] %v500_v33  ;;  %v713_v53 = vmul.f32 %v500_v33, %v500_v33  ;;  %v674_v56 = vadd.f32 %v673_v50, %v500_v33  ;;  %v721_v20 = vmul.f32 %v1200_v34, %v1200_v34 }
  0xb4   : > { %616 = vst [vmem:[%s1165_s30 + $0x58] sm:$0xff] %v1200_v34 }
  0xb5   : > { %631 = vst [vmem:[%s1165_s30 + $0xd0] sm:$0xff] %v1202_v35  ;;  %v744_v58 = vadd.f32 %v743_v55, %v713_v53 }
  0xb9   : > { %v1209_v36 = vpop.f32.mrf.mxu2  ;;  %v1213_v39 = vpop.f32.mrf.mxu3 }
  0xba   : > { %v503_v37 = vpop.f32.mrf.mxu0  ;;  %v1211_v38 = vpop.f32.mrf.mxu1  ;;  %624 = vst [vmem:[%s1165_s30 + $0x98] sm:$0xff] %v1209_v36 }
  0xbb   : > { %609 = vst [vmem:[%s1165_s30 + $0x20] sm:$0xff] %v503_v37  ;;  %v714_v57 = vmul.f32 %v503_v37, %v503_v37  ;;  %v675_v59 = vadd.f32 %v674_v56, %v503_v37  ;;  %v729_v56 = vmul.f32 %v1209_v36, %v1209_v36 }
  0xbc   : > { %617 = vst [vmem:[%s1165_s30 + $0x60] sm:$0xff] %v1211_v38 }
  0xbd   : > { %632 = vst [vmem:[%s1165_s30 + $0xd8] sm:$0xff] %v1213_v39  ;;  %v745_v61 = vadd.f32 %v744_v58, %v714_v57 }
  0xc1   : > { %v1224_v40 = vpop.f32.mrf.mxu2  ;;  %v1228_v43 = vpop.f32.mrf.mxu3 }
  0xc2   : > { %v505_v41 = vpop.f32.mrf.mxu0  ;;  %v1226_v42 = vpop.f32.mrf.mxu1  ;;  %625 = vst [vmem:[%s1165_s30 + $0xa0] sm:$0xff] %v1224_v40 }
  0xc3   : > { %610 = vst [vmem:[%s1165_s30 + $0x28] sm:$0xff] %v505_v41  ;;  %v715_v60 = vmul.f32 %v505_v41, %v505_v41  ;;  %v676_v62 = vadd.f32 %v675_v59, %v505_v41  ;;  %v723_v29 = vmul.f32 %v1226_v42, %v1226_v42 }
  0xc4   : > { %618 = vst [vmem:[%s1165_s30 + $0x68] sm:$0xff] %v1226_v42 }
  0xc5   : > { %633 = vst [vmem:[%s1165_s30 + $0xe0] sm:$0xff] %v1228_v43  ;;  %v746_v3 = vadd.f32 %v745_v61, %v715_v60 }
  0xc9   : > { %v1235_v48 = vpop.f32.mrf.mxu2  ;;  %v1237_v54 = vpop.f32.mrf.mxu3 }
  0xca   : > { %v508_v51 = vpop.f32.mrf.mxu0  ;;  %v528_v52 = vpop.f32.mrf.mxu1  ;;  %626 = vst [vmem:[%s1165_s30 + $0xa8] sm:$0xff] %v1235_v48  ;;  %v731_v61 = vmul.f32 %v1235_v48, %v1235_v48 }
  0xcb   : > { %611 = vst [vmem:[%s1165_s30 + $0x30] sm:$0xff] %v508_v51  ;;  %v716_v63 = vmul.f32 %v508_v51, %v508_v51  ;;  %v677_v4 = vadd.f32 %v676_v62, %v508_v51  ;;  %v724_v41 = vmul.f32 %v528_v52, %v528_v52 }
  0xcc   : > { %619 = vst [vmem:[%s1165_s30 + $0x70] sm:$0xff] %v528_v52 }
  0xcd   : > { %634 = vst [vmem:[%s1165_s30 + $0xe8] sm:$0xff] %v1237_v54  ;;  %v747_v6 = vadd.f32 %v746_v3, %v716_v63 }
  0xd1   : > { %v548_v0 = vpop.f32.mrf.mxu2  ;;  %v1247_v5 = vpop.f32.mrf.mxu3 }
  0xd2   : > { %v510_v1 = vpop.f32.mrf.mxu0  ;;  %v530_v2 = vpop.f32.mrf.mxu1  ;;  %627 = vst [vmem:[%s1165_s30 + $0xb0] sm:$0xff] %v548_v0 }
  0xd3   : > { %612 = vst [vmem:[%s1165_s30 + $0x38] sm:$0xff] %v510_v1  ;;  %v678_v7 = vadd.f32 %v677_v4, %v510_v1  ;;  %v717_v8 = vmul.f32 %v510_v1, %v510_v1  ;;  %v725_v46 = vmul.f32 %v530_v2, %v530_v2  ;;  %v732_v1 = vmul.f32 %v548_v0, %v548_v0 }
  0xd4   : > { %620 = vst [vmem:[%s1165_s30 + $0x78] sm:$0xff] %v530_v2 }
  0xd5   : > { %v679_v10 = vadd.f32 %v678_v7, %v1167_v23  ;;  %v748_v11 = vadd.f32 %v747_v6, %v717_v8  ;;  %635 = vst [vmem:[%s1165_s30 + $0xf0] sm:$0xff] %v1247_v5  ;;  %v722_v23 = vmul.f32 %v1211_v38, %v1211_v38 }
  0xd7   : > { %v680_v13 = vadd.f32 %v679_v10, %v1174_v26  ;;  %v749_v14 = vadd.f32 %v748_v11, %v718_v9  ;;  %v737_v11 = vmul.f32 %v1213_v39, %v1213_v39 }
  0xd9   : > { %v550_v15 = vpop.f32.mrf.mxu2  ;;  %v681_v17 = vadd.f32 %v680_v13, %v1187_v30  ;;  %v750_v18 = vadd.f32 %v749_v14, %v719_v12  ;;  %v1261_v19 = vpop.f32.mrf.mxu3  ;;  %v738_v13 = vmul.f32 %v1228_v43, %v1228_v43 }
  0xda   : > { %628 = vst [vmem:[%s1165_s30 + $0xb8] sm:$0xff] %v550_v15  ;;  %v733_v4 = vmul.f32 %v550_v15, %v550_v15 }
  0xdb   : > { %v751_v21 = vadd.f32 %v750_v18, %v720_v16  ;;  %v682_v22 = vadd.f32 %v681_v17, %v1200_v34  ;;  %636 = vst [vmem:[%s1165_s30 + $0xf8] sm:$0xff] %v1261_v19  ;;  %v739_v16 = vmul.f32 %v1237_v54, %v1237_v54 }
  0xdd   : > { %v683_v25 = vadd.f32 %v682_v22, %v1211_v38  ;;  %v752_v26 = vadd.f32 %v751_v21, %v721_v20  ;;  %v727_v38 = vmul.f32 %v1183_v28, %v1183_v28 }
  0xdf   : > { %v684_v30 = vadd.f32 %v683_v25, %v1226_v42  ;;  %v753_v33 = vadd.f32 %v752_v26, %v722_v23  ;;  %v728_v42 = vmul.f32 %v1198_v32, %v1198_v32 }
  0xe1   : > { %v685_v37 = vadd.f32 %v684_v30, %v528_v52  ;;  %v754_v44 = vadd.f32 %v753_v33, %v723_v29 }
  0xe3   : > { %v755_v34 = vadd.f32 %v754_v44, %v724_v41  ;;  %v686_v45 = vadd.f32 %v685_v37, %v530_v2 }
  0xe5   : > { %v687_v49 = vadd.f32 %v686_v45, %v1172_v24  ;;  %v756_v50 = vadd.f32 %v755_v34, %v725_v46  ;;  %v730_v24 = vmul.f32 %v1224_v40, %v1224_v40 }
  0xe7   : > { %v688_v51 = vadd.f32 %v687_v49, %v1183_v28  ;;  %v757_v53 = vadd.f32 %v756_v50, %v726_v47 }
  0xe9   : > { %v758_v52 = vadd.f32 %v757_v53, %v727_v38  ;;  %v689_v55 = vadd.f32 %v688_v51, %v1198_v32 }
  0xeb   : > { %v690_v57 = vadd.f32 %v689_v55, %v1209_v36  ;;  %v759_v58 = vadd.f32 %v758_v52, %v728_v42  ;;  %v734_v36 = vmul.f32 %v1176_v27, %v1176_v27 }
  0xed   : > { %v691_v59 = vadd.f32 %v690_v57, %v1224_v40  ;;  %v760_v60 = vadd.f32 %v759_v58, %v729_v56  ;;  %v735_v40 = vmul.f32 %v1189_v31, %v1189_v31 }
  0xef   : > { %v692_v28 = vadd.f32 %v691_v59, %v1235_v48  ;;  %v761_v62 = vadd.f32 %v760_v60, %v730_v24  ;;  %v736_v48 = vmul.f32 %v1202_v35, %v1202_v35 }
  0xf1   : > { %v762_v63 = vadd.f32 %v761_v62, %v731_v61  ;;  %v693_v32 = vadd.f32 %v692_v28, %v548_v0 }
  0xf3   : > { %v763_v2 = vadd.f32 %v762_v63, %v732_v1  ;;  %v694_v3 = vadd.f32 %v693_v32, %v550_v15 }
  0xf5   : > { %v695_v6 = vadd.f32 %v694_v3, %v1176_v27  ;;  %v764_v7 = vadd.f32 %v763_v2, %v733_v4 }
  0xf7   : > { %v696_v8 = vadd.f32 %v695_v6, %v1189_v31  ;;  %v765_v9 = vadd.f32 %v764_v7, %v734_v36 }
  0xf9   : > { %v766_v0 = vadd.f32 %v765_v9, %v735_v40  ;;  %v697_v10 = vadd.f32 %v696_v8, %v1202_v35 }
  0xfb   : > { %v698_v12 = vadd.f32 %v697_v10, %v1213_v39  ;;  %v767_v27 = vadd.f32 %v766_v0, %v736_v48  ;;  %v740_v39 = vmul.f32 %v1247_v5, %v1247_v5 }
  0xfd   : > { %v699_v31 = vadd.f32 %v698_v12, %v1228_v43  ;;  %v768_v14 = vadd.f32 %v767_v27, %v737_v11  ;;  %v741_v43 = vmul.f32 %v1261_v19, %v1261_v19 }
  0xff   : > { %v700_v15 = vadd.f32 %v699_v31, %v1237_v54  ;;  %v769_v17 = vadd.f32 %v768_v14, %v738_v13 }
 0x101   : > { %v770_v35 = vadd.f32 %v769_v17, %v739_v16  ;;  %v701_v18 = vadd.f32 %v700_v15, %v1247_v5 }
 0x103   : > { %v771_v20 = vadd.f32 %v770_v35, %v740_v39  ;;  %v702_v21 = vadd.f32 %v701_v18, %v1261_v19 }
 0x105   : > { %v703_v22 = vrot.slane %v702_v21, 4  ;;  %v772_v23 = vadd.f32 %v771_v20, %v741_v43 }
 0x107   : > { %v704_v25 = vadd.f32 %v703_v22, %v702_v21  ;;  %v773_v26 = vrot.slane %v772_v23, 4 }
 0x109   : > { %v705_v54 = vrot.slane %v704_v25, 2  ;;  %v774_v29 = vadd.f32 %v773_v26, %v772_v23 }
 0x10b   : > { %v706_v30 = vadd.f32 %v705_v54, %v704_v25  ;;  %v775_v33 = vrot.slane %v774_v29, 2 }
 0x10d   : > { %v707_v37 = vrot.slane %v706_v30, 1  ;;  %v776_v41 = vadd.f32 %v775_v33, %v774_v29 }
 0x10f   : > { %v708_v5 = vadd.f32 %v707_v37, %v706_v30  ;;  %v777_v44 = vrot.slane %v776_v41, 1 }
 0x111   : > { %709 = vst [vmem:[%s229_s7] sm:$0x1] %v708_v5  ;;  %v778_v19 = vadd.f32 %v777_v44, %v776_v41 }
 0x113   : > { %779 = vst [vmem:[%s229_s7 + $0x1] sm:$0x1] %v778_v19 }
 0x114 PF: > { %s14_s14 = sadd.s32 1, %s1069_s14   ;;  %s1337_s12 = smov %s1065_s13 }
 0x115   : > { %p11_p6 = scmp.ge.s32.totalorder %s14_s14, 4   ;;  %s1338_s13 = smov %s1340_s15 }
 0x117   :  { %13 = sbr.rel (!%p11_p6) target bundleno = 2 (0x2), region = 81 }

// kernel: skip_connection_block.6
= control target key start
LH: loop header
LB: loop body
LE: loop exit
PB: predicated region body
PF: predicated region fallthrough
CT: control target
= control target key end

     0   :  { %s1746_s21 = smov 0   ;;  %s1748_s22 = smov 0   ;;  %s2071_s0 = inlined_call_operand.vmem [shape: bf16[512,72], index: 0, kind: input, shape index: {}]   ;;  %s2072_s1 = inlined_call_operand.vmem [shape: bf16[72,128], index: 1, kind: input, shape index: {}]   ;;  %s2073_s2 = inlined_call_operand.vmem [shape: bf16[512,8], index: 2, kind: input, shape index: {}]   ;;  %s2074_s3 = inlined_call_operand.vmem [shape: bf16[8,128], index: 3, kind: input, shape index: {}]   ;;  %s2075_s4 = inlined_call_operand.vmem [shape: f32[512,128], index: 4, kind: output, shape index: {0}]   ;;  %s2076_s5 = inlined_call_operand.vmem [shape: f32[2,2,128], index: 5, kind: output, shape index: {1}]   ;;  %s2077_s6 = inlined_call_operand.vmem [shape: f32[2,2,128], index: 6, kind: output, shape index: {2}]  }
   0x1   :  { %s1750_s23 = smov 0  }
   0x2 LB: > { %s29_s24 = sadd.s32 1, %s1705_s22  ;;  %p1433_p0 = scmp.ge.s32.totalorder %s1709_s23, 1  ;;  %s1709_s23 = sphi %s1750_s23, %s17_s23   ;;  %s1705_s22 = sphi %s1748_s22, %s2079_s22   ;;  %s1701_s21 = sphi %s1746_s21, %s2078_s21  }
   0x3   : > { %p31_p1 = scmp.ge.s32.totalorder %s29_s24, 2  ;;  %p257_p2 = scmp.lt.s32.totalorder %s1709_s23, 3 }
   0x5   : > { %s2081_s24 = smov (%p31_p1, %s29_s24), 0  ;;  %p258_p3 = pnand %p1433_p0, %p257_p2 }
   0x6   : > { %s1434_s29 = sshll.u32 (!%p258_p3), %s1701_s21, 5  ;;  %p335_p5 = scmp.lt.s32.totalorder (!%p258_p3), %s1701_s21, 1 }
   0x7   : > { %261 = sbr.rel (%p258_p3) target bundleno = 332 (0x14c), region = 36  ;;  %p309_p4 = scmp.lt.s32.totalorder (!%p258_p3), %s1434_s29, 63 }
   0xc   : > { %v452_v0 = vld [vmem:[%s2072_s1 + $0x20] sm:$0xf]  ;;  %vm609_vm0 = vcmask 1043456   ;;  %s2083_s29 = smov (!%p309_p4, %s1434_s29), 63  ;;  %v1639_v6 = vld [vmem:[%s2072_s1 + $0x18] sm:$0xff]  ;;  %vm1022_vm1 = vcmask 64512  }
   0xd   : > { %v941_v1 = vld [vmem:[%s2074_s3] sm:$0xf]  ;;  %v550_v2 = vunpack.c.l.b16 %v452_v0  ;;  %s1435_s8 = sshll.u32 %s2083_s29, 2  ;;  %v1638_v8 = vld [vmem:[%s2072_s1 + $0x10] sm:$0xff]  ;;  %v1637_v9 = vld [vmem:[%s2072_s1 + $0x8] sm:$0xff]  ;;  %vm560_vm2 = vcmask 588800  }
   0xe   : > { %v1072_v3 = vsel %vm609_vm0, %v941_v1, 0  ;;  %s1782_s11 = scalar_lea.vmem %s2073_s2, %s1435_s8  ;;  %v1636_v10 = vld [vmem:[%s2072_s1] sm:$0xff]  ;;  %s1798_s20 = scalar_lea.vmem %s2071_s0, %s1435_s8 }
   0xf   : > { %1081 = vmatpush.bf16.msra.mxu1 %v1072_v3  ;;  %1661 = vmatpush.bf16.msra.mxu3 %v1072_v3  ;;  %v555_v4 = vpack.c.b16 %v550_v2, %v550_v2  ;;  %v1640_v7 = vld [vmem:[%s1782_s11] sm:$0xff]  ;;  %v1641_v12 = vld [vmem:[%s1782_s11 + $0x8] sm:$0xff]  ;;  %v1642_v16 = vld [vmem:[%s1782_s11 + $0x10] sm:$0xff]  ;;  %s1439_s25 = sshll.u32 %s2083_s29, 3  ;;  %s2085_s21 = smov (!%p335_p5, %s1701_s21), 1 }
  0x10   : > { %v1620_v11 = vld [vmem:[%s1798_s20] sm:$0xff]  ;;  %v1649_v14 = vld [vmem:[%s1782_s11 + $0x48] sm:$0xff]  ;;  %v1650_v18 = vld [vmem:[%s1782_s11 + $0x50] sm:$0xff]  ;;  %s1866_s28 = scalar_lea.vmem %s2075_s4, %s1439_s25  ;;  %s1440_s29 = sshll.u32 %s2085_s21, 1 }
  0x11   : > { %v611_v5 = vsel %vm609_vm0, %v555_v4, 0  ;;  %v1628_v13 = vld [vmem:[%s1798_s20 + $0x40] sm:$0xff]  ;;  %v1621_v15 = vld [vmem:[%s1798_s20 + $0x8] sm:$0xff]  ;;  %v1622_v19 = vld [vmem:[%s1798_s20 + $0x10] sm:$0xff]  ;;  %s342_s8 = scalar_lea.vmem %s2077_s6, %s1440_s29  ;;  %s338_s10 = scalar_lea.vmem %s2076_s5, %s1440_s29 }
  0x12   : > { %616 = vmatpush.bf16.msra.mxu0 %v611_v5  ;;  %1656 = vmatpush.bf16.msra.mxu2 %v611_v5  ;;  %v1629_v17 = vld [vmem:[%s1798_s20 + $0x48] sm:$0xff]  ;;  %v1643_v20 = vld [vmem:[%s1782_s11 + $0x18] sm:$0xff]  ;;  %v1630_v21 = vld [vmem:[%s1798_s20 + $0x50] sm:$0xff] }
  0x13   : > { %1602 = vmatmul.msk.bf16.vlgmr.msra.gmra.mxu1 %vm1022_vm1, %v1640_v7  ;;  %1611 = vmatmul.msk.bf16.vlgmr.msra.gmra.mxu3 %vm1022_vm1, %v1649_v14  ;;  %v1651_v22 = vld [vmem:[%s1782_s11 + $0x58] sm:$0xff]  ;;  %v1644_v24 = vld [vmem:[%s1782_s11 + $0x20] sm:$0xff]  ;;  %v1645_v28 = vld [vmem:[%s1782_s11 + $0x28] sm:$0xff] }
  0x14   : > { %v1623_v23 = vld [vmem:[%s1798_s20 + $0x18] sm:$0xff]  ;;  %v1652_v26 = vld [vmem:[%s1782_s11 + $0x60] sm:$0xff]  ;;  %v1653_v30 = vld [vmem:[%s1782_s11 + $0x68] sm:$0xff] }
  0x15   : > { %v1631_v25 = vld [vmem:[%s1798_s20 + $0x58] sm:$0xff]  ;;  %v1624_v27 = vld [vmem:[%s1798_s20 + $0x20] sm:$0xff]  ;;  %v1625_v31 = vld [vmem:[%s1798_s20 + $0x28] sm:$0xff] }
  0x16   : > { %617 = vmatpush.bf16.msra.mxu0 %v1639_v6  ;;  %1657 = vmatpush.bf16.msra.mxu2 %v1639_v6  ;;  %v1632_v29 = vld [vmem:[%s1798_s20 + $0x60] sm:$0xff]  ;;  %v1646_v32 = vld [vmem:[%s1782_s11 + $0x30] sm:$0xff]  ;;  %v1633_v33 = vld [vmem:[%s1798_s20 + $0x68] sm:$0xff] }
  0x17   : > { %v1654_v34 = vld [vmem:[%s1782_s11 + $0x70] sm:$0xff]  ;;  %v1647_v36 = vld [vmem:[%s1782_s11 + $0x38] sm:$0xff]  ;;  %v1648_v40 = vld [vmem:[%s1782_s11 + $0x40] sm:$0xff] }
  0x18   : > { %v1626_v35 = vld [vmem:[%s1798_s20 + $0x30] sm:$0xff]  ;;  %v1655_v38 = vld [vmem:[%s1782_s11 + $0x78] sm:$0xff] }
  0x19   : > { %v1634_v37 = vld [vmem:[%s1798_s20 + $0x70] sm:$0xff]  ;;  %v1627_v39 = vld [vmem:[%s1798_s20 + $0x38] sm:$0xff] }
  0x1a   : > { %618 = vmatpush.bf16.msra.mxu0 %v1638_v8  ;;  %1658 = vmatpush.bf16.msra.mxu2 %v1638_v8  ;;  %v1635_v41 = vld [vmem:[%s1798_s20 + $0x78] sm:$0xff] }
  0x1e   : > { %619 = vmatpush.bf16.msra.mxu0 %v1637_v9  ;;  %1659 = vmatpush.bf16.msra.mxu2 %v1637_v9 }
  0x22   : > { %620 = vmatpush.bf16.msra.mxu0 %v1636_v10  ;;  %1660 = vmatpush.bf16.msra.mxu2 %v1636_v10 }
  0x23   : > { %1603 = vmatmul.msk.bf16.gmra.mxu1 %vm1022_vm1, %v1641_v12  ;;  %1612 = vmatmul.msk.bf16.gmra.mxu3 %vm1022_vm1, %v1650_v18 }
  0x25   : > { %1522 = vmatmul.msk.bf16.vlgmr.msra.gmra.mxu0 %vm560_vm2, %v1620_v11  ;;  %1530 = vmatmul.msk.bf16.vlgmr.msra.gmra.mxu2 %vm560_vm2, %v1628_v13 }
  0x33   : > { %1604 = vmatmul.msk.bf16.gmra.mxu1 %vm1022_vm1, %v1642_v16  ;;  %1613 = vmatmul.msk.bf16.gmra.mxu3 %vm1022_vm1, %v1651_v22 }
  0x35   : > { %1523 = vmatmul.msk.bf16.gmra.mxu0 %vm560_vm2, %v1621_v15  ;;  %1531 = vmatmul.msk.bf16.gmra.mxu2 %vm560_vm2, %v1629_v17 }
  0x43   : > { %1605 = vmatmul.msk.bf16.gmra.mxu1 %vm1022_vm1, %v1643_v20  ;;  %1614 = vmatmul.msk.bf16.gmra.mxu3 %vm1022_vm1, %v1652_v26 }
  0x45   : > { %1524 = vmatmul.msk.bf16.gmra.mxu0 %vm560_vm2, %v1622_v19  ;;  %1532 = vmatmul.msk.bf16.gmra.mxu2 %vm560_vm2, %v1630_v21 }
  0x53   : > { %1606 = vmatmul.msk.bf16.gmra.mxu1 %vm1022_vm1, %v1644_v24  ;;  %1615 = vmatmul.msk.bf16.gmra.mxu3 %vm1022_vm1, %v1653_v30 }
  0x55   : > { %1525 = vmatmul.msk.bf16.gmra.mxu0 %vm560_vm2, %v1623_v23  ;;  %1533 = vmatmul.msk.bf16.gmra.mxu2 %vm560_vm2, %v1631_v25 }
  0x63   : > { %1607 = vmatmul.msk.bf16.gmra.mxu1 %vm1022_vm1, %v1645_v28  ;;  %1616 = vmatmul.msk.bf16.gmra.mxu3 %vm1022_vm1, %v1654_v34 }
  0x65   : > { %1526 = vmatmul.msk.bf16.gmra.mxu0 %vm560_vm2, %v1624_v27  ;;  %1534 = vmatmul.msk.bf16.gmra.mxu2 %vm560_vm2, %v1632_v29 }
  0x73   : > { %1608 = vmatmul.msk.bf16.gmra.mxu1 %vm1022_vm1, %v1646_v32  ;;  %1617 = vmatmul.msk.bf16.gmra.mxu3 %vm1022_vm1, %v1655_v38 }
  0x75   : > { %1527 = vmatmul.msk.bf16.gmra.mxu0 %vm560_vm2, %v1625_v31  ;;  %1535 = vmatmul.msk.bf16.gmra.mxu2 %vm560_vm2, %v1633_v33 }
  0x83   : > { %1609 = vmatmul.msk.bf16.gmra.mxu1 %vm1022_vm1, %v1647_v36 }
  0x85   : > { %1528 = vmatmul.msk.bf16.gmra.mxu0 %vm560_vm2, %v1626_v35  ;;  %1536 = vmatmul.msk.bf16.gmra.mxu2 %vm560_vm2, %v1634_v37 }
  0x90   : > { %v1083_v42 = vpop.f32.mrf.mxu1 }
  0x91   : > { %v1201_v44 = vmul.f32 %v1083_v42, %v1083_v42 }
  0x93   : > { %1610 = vmatmul.msk.bf16.gmra.mxu1 %vm1022_vm1, %v1648_v40 }
  0x95   : > { %1529 = vmatmul.msk.bf16.gmra.mxu0 %vm560_vm2, %v1627_v39  ;;  %1537 = vmatmul.msk.bf16.gmra.mxu2 %vm560_vm2, %v1635_v41 }
  0x96   : > { %v1876_v2 = vpop.f32.mrf.mxu3 }
  0x98   : > { %v1085_v43 = vpop.f32.mrf.mxu1 }
  0x99   : > { %v1163_v45 = vadd.f32 %v1085_v43, %v1083_v42  ;;  %v1202_v46 = vmul.f32 %v1085_v43, %v1085_v43 }
  0x9b   : > { %v1233_v47 = vadd.f32 %v1202_v46, %v1201_v44 }
  0x9e   : > { %v1886_v16 = vpop.f32.mrf.mxu3 }
  0xa0   : > { %v1088_v49 = vpop.f32.mrf.mxu1 }
  0xa1   : > { %v1164_v50 = vadd.f32 %v1163_v45, %v1088_v49  ;;  %v1203_v51 = vmul.f32 %v1088_v49, %v1088_v49 }
  0xa2   : > { %v622_v48 = vpop.f32.mrf.mxu0 }
  0xa3   : > { %734 = vst [vmem:[%s1866_s28] sm:$0xff] %v622_v48  ;;  %v1234_v52 = vadd.f32 %v1233_v47, %v1203_v51  ;;  %v839_v58 = vmul.f32 %v622_v48, %v622_v48 }
  0xa6   : > { %v1893_v28 = vpop.f32.mrf.mxu3 }
  0xa8   : > { %v1869_v53 = vpop.f32.mrf.mxu2  ;;  %v1090_v55 = vpop.f32.mrf.mxu1 }
  0xa9   : > { %v1165_v56 = vadd.f32 %v1164_v50, %v1090_v55  ;;  %v1204_v57 = vmul.f32 %v1090_v55, %v1090_v55  ;;  %750 = vst [vmem:[%s1866_s28 + $0x80] sm:$0xff] %v1869_v53 }
  0xaa   : > { %v624_v54 = vpop.f32.mrf.mxu0 }
  0xab   : > { %735 = vst [vmem:[%s1866_s28 + $0x8] sm:$0xff] %v624_v54  ;;  %v801_v59 = vadd.f32 %v624_v54, %v622_v48  ;;  %v840_v60 = vmul.f32 %v624_v54, %v624_v54  ;;  %v1235_v61 = vadd.f32 %v1234_v52, %v1204_v57 }
  0xad   : > { %v871_v62 = vadd.f32 %v840_v60, %v839_v58 }
  0xae   : > { %v1902_v33 = vpop.f32.mrf.mxu3 }
  0xb0   : > { %v1874_v63 = vpop.f32.mrf.mxu2  ;;  %v1093_v1 = vpop.f32.mrf.mxu1 }
  0xb1   : > { %v1166_v3 = vadd.f32 %v1165_v56, %v1093_v1  ;;  %v1205_v4 = vmul.f32 %v1093_v1, %v1093_v1  ;;  %751 = vst [vmem:[%s1866_s28 + $0x88] sm:$0xff] %v1874_v63 }
  0xb2   : > { %v627_v0 = vpop.f32.mrf.mxu0 }
  0xb3   : > { %736 = vst [vmem:[%s1866_s28 + $0x10] sm:$0xff] %v627_v0  ;;  %v802_v5 = vadd.f32 %v801_v59, %v627_v0  ;;  %v841_v6 = vmul.f32 %v627_v0, %v627_v0  ;;  %v1236_v7 = vadd.f32 %v1235_v61, %v1205_v4 }
  0xb5   : > { %v872_v8 = vadd.f32 %v871_v62, %v841_v6 }
  0xb6   : > { %v1909_v39 = vpop.f32.mrf.mxu3 }
  0xb8   : > { %v1881_v9 = vpop.f32.mrf.mxu2  ;;  %v1095_v11 = vpop.f32.mrf.mxu1 }
  0xb9   : > { %v1167_v12 = vadd.f32 %v1166_v3, %v1095_v11  ;;  %v1206_v13 = vmul.f32 %v1095_v11, %v1095_v11  ;;  %752 = vst [vmem:[%s1866_s28 + $0x90] sm:$0xff] %v1881_v9 }
  0xba   : > { %v629_v10 = vpop.f32.mrf.mxu0 }
  0xbb   : > { %737 = vst [vmem:[%s1866_s28 + $0x18] sm:$0xff] %v629_v10  ;;  %v803_v14 = vadd.f32 %v802_v5, %v629_v10  ;;  %v842_v15 = vmul.f32 %v629_v10, %v629_v10  ;;  %v1237_v17 = vadd.f32 %v1236_v7, %v1206_v13 }
  0xbd   : > { %v873_v18 = vadd.f32 %v872_v8, %v842_v15 }
  0xbe   : > { %v1919_v43 = vpop.f32.mrf.mxu3 }
  0xc0   : > { %v1888_v19 = vpop.f32.mrf.mxu2  ;;  %v1098_v21 = vpop.f32.mrf.mxu1 }
  0xc1   : > { %v1168_v22 = vadd.f32 %v1167_v12, %v1098_v21  ;;  %v1207_v23 = vmul.f32 %v1098_v21, %v1098_v21  ;;  %753 = vst [vmem:[%s1866_s28 + $0x98] sm:$0xff] %v1888_v19 }
  0xc2   : > { %v632_v20 = vpop.f32.mrf.mxu0 }
  0xc3   : > { %738 = vst [vmem:[%s1866_s28 + $0x20] sm:$0xff] %v632_v20  ;;  %v804_v24 = vadd.f32 %v803_v14, %v632_v20  ;;  %v843_v25 = vmul.f32 %v632_v20, %v632_v20  ;;  %v1238_v26 = vadd.f32 %v1237_v17, %v1207_v23 }
  0xc5   : > { %v874_v27 = vadd.f32 %v873_v18, %v843_v25 }
  0xc6   : > { %v1926_v47 = vpop.f32.mrf.mxu3 }
  0xc8   : > { %v1895_v29 = vpop.f32.mrf.mxu2  ;;  %v1100_v31 = vpop.f32.mrf.mxu1 }
  0xc9   : > { %754 = vst [vmem:[%s1866_s28 + $0xa0] sm:$0xff] %v1895_v29  ;;  %v1208_v60 = vmul.f32 %v1100_v31, %v1100_v31  ;;  %v1169_v62 = vadd.f32 %v1168_v22, %v1100_v31 }
  0xca   : > { %v634_v30 = vpop.f32.mrf.mxu0 }
  0xcb   : > { %739 = vst [vmem:[%s1866_s28 + $0x28] sm:$0xff] %v634_v30  ;;  %v844_v61 = vmul.f32 %v634_v30, %v634_v30  ;;  %v805_v1 = vadd.f32 %v804_v24, %v634_v30  ;;  %v1239_v5 = vadd.f32 %v1238_v26, %v1208_v60 }
  0xcd   : > { %v875_v10 = vadd.f32 %v874_v27, %v844_v61 }
  0xce   : > { %v1933_v51 = vpop.f32.mrf.mxu3 }
  0xd0   : > { %v1900_v32 = vpop.f32.mrf.mxu2  ;;  %v1103_v35 = vpop.f32.mrf.mxu1 }
  0xd1   : > { %755 = vst [vmem:[%s1866_s28 + $0xa8] sm:$0xff] %v1900_v32  ;;  %v1209_v0 = vmul.f32 %v1103_v35, %v1103_v35  ;;  %v1170_v6 = vadd.f32 %v1169_v62, %v1103_v35 }
  0xd2   : > { %v637_v34 = vpop.f32.mrf.mxu0 }
  0xd3   : > { %740 = vst [vmem:[%s1866_s28 + $0x30] sm:$0xff] %v637_v34  ;;  %v845_v3 = vmul.f32 %v637_v34, %v637_v34  ;;  %v806_v11 = vadd.f32 %v805_v1, %v637_v34  ;;  %v1240_v14 = vadd.f32 %v1239_v5, %v1209_v0 }
  0xd5   : > { %v876_v18 = vadd.f32 %v875_v10, %v845_v3 }
  0xd6   : > { %v1942_v59 = vpop.f32.mrf.mxu3 }
  0xd8   : > { %v1907_v36 = vpop.f32.mrf.mxu2  ;;  %v1105_v38 = vpop.f32.mrf.mxu1 }
  0xd9   : > { %756 = vst [vmem:[%s1866_s28 + $0xb0] sm:$0xff] %v1907_v36  ;;  %v1210_v7 = vmul.f32 %v1105_v38, %v1105_v38  ;;  %v1171_v15 = vadd.f32 %v1170_v6, %v1105_v38 }
  0xda   : > { %v639_v37 = vpop.f32.mrf.mxu0 }
  0xdb   : > { %741 = vst [vmem:[%s1866_s28 + $0x38] sm:$0xff] %v639_v37  ;;  %v846_v12 = vmul.f32 %v639_v37, %v639_v37  ;;  %v807_v20 = vadd.f32 %v806_v11, %v639_v37  ;;  %v1241_v23 = vadd.f32 %v1240_v14, %v1210_v7 }
  0xdd   : > { %v877_v26 = vadd.f32 %v876_v18, %v846_v12 }
  0xde   : > { %v1952_v22 = vpop.f32.mrf.mxu3 }
  0xe0   : > { %v1914_v40 = vpop.f32.mrf.mxu2  ;;  %v1108_v42 = vpop.f32.mrf.mxu1 }
  0xe1   : > { %757 = vst [vmem:[%s1866_s28 + $0xb8] sm:$0xff] %v1914_v40  ;;  %v1211_v17 = vmul.f32 %v1108_v42, %v1108_v42  ;;  %v1172_v24 = vadd.f32 %v1171_v15, %v1108_v42 }
  0xe2   : > { %v642_v41 = vpop.f32.mrf.mxu0 }
  0xe3   : > { %742 = vst [vmem:[%s1866_s28 + $0x40] sm:$0xff] %v642_v41  ;;  %v847_v21 = vmul.f32 %v642_v41, %v642_v41  ;;  %v808_v30 = vadd.f32 %v807_v20, %v642_v41  ;;  %v1242_v31 = vadd.f32 %v1241_v23, %v1211_v17 }
  0xe5   : > { %v878_v38 = vadd.f32 %v877_v26, %v847_v21 }
  0xe6   : > { %v1959_v21 = vpop.f32.mrf.mxu3 }
  0xe8   : > { %v1921_v44 = vpop.f32.mrf.mxu2  ;;  %v1110_v46 = vpop.f32.mrf.mxu1 }
  0xe9   : > { %758 = vst [vmem:[%s1866_s28 + $0xc0] sm:$0xff] %v1921_v44  ;;  %v1212_v25 = vmul.f32 %v1110_v46, %v1110_v46  ;;  %v1173_v34 = vadd.f32 %v1172_v24, %v1110_v46 }
  0xea   : > { %v644_v45 = vpop.f32.mrf.mxu0 }
  0xeb   : > { %743 = vst [vmem:[%s1866_s28 + $0x48] sm:$0xff] %v644_v45  ;;  %v848_v27 = vmul.f32 %v644_v45, %v644_v45  ;;  %v809_v60 = vadd.f32 %v808_v30, %v644_v45  ;;  %v1243_v37 = vadd.f32 %v1242_v31, %v1212_v25 }
  0xed   : > { %v879_v5 = vadd.f32 %v878_v38, %v848_v27 }
  0xf0   : > { %v1928_v48 = vpop.f32.mrf.mxu2  ;;  %v1113_v50 = vpop.f32.mrf.mxu1 }
  0xf1   : > { %759 = vst [vmem:[%s1866_s28 + $0xc8] sm:$0xff] %v1928_v48  ;;  %v1213_v35 = vmul.f32 %v1113_v50, %v1113_v50  ;;  %v1174_v0 = vadd.f32 %v1173_v34, %v1113_v50 }
  0xf2   : > { %v647_v49 = vpop.f32.mrf.mxu0 }
  0xf3   : > { %744 = vst [vmem:[%s1866_s28 + $0x50] sm:$0xff] %v647_v49  ;;  %v849_v61 = vmul.f32 %v647_v49, %v647_v49  ;;  %v810_v42 = vadd.f32 %v809_v60, %v647_v49  ;;  %v1244_v41 = vadd.f32 %v1243_v37, %v1213_v35 }
  0xf5   : > { %v880_v46 = vadd.f32 %v879_v5, %v849_v61  ;;  %v855_v5 = vmul.f32 %v1869_v53, %v1869_v53 }
  0xf8   : > { %v1935_v52 = vpop.f32.mrf.mxu2  ;;  %v1115_v55 = vpop.f32.mrf.mxu1 }
  0xf9   : > { %760 = vst [vmem:[%s1866_s28 + $0xd0] sm:$0xff] %v1935_v52  ;;  %v1214_v1 = vmul.f32 %v1115_v55, %v1115_v55  ;;  %v1175_v10 = vadd.f32 %v1174_v0, %v1115_v55 }
  0xfa   : > { %v649_v54 = vpop.f32.mrf.mxu0 }
  0xfb   : > { %745 = vst [vmem:[%s1866_s28 + $0x58] sm:$0xff] %v649_v54  ;;  %v850_v6 = vmul.f32 %v649_v54, %v649_v54  ;;  %v811_v12 = vadd.f32 %v810_v42, %v649_v54  ;;  %v1245_v14 = vadd.f32 %v1244_v41, %v1214_v1 }
  0xfd   : > { %v881_v18 = vadd.f32 %v880_v46, %v850_v6  ;;  %v1220_v6 = vmul.f32 %v1886_v16, %v1886_v16  ;;  %v1155_v46 = vpop.f32.mrf.mxu3 }
 0x100   : > { %v1940_v56 = vpop.f32.mrf.mxu2  ;;  %v1118_v58 = vpop.f32.mrf.mxu1 }
 0x101   : > { %761 = vst [vmem:[%s1866_s28 + $0xd8] sm:$0xff] %v1940_v56  ;;  %v1215_v11 = vmul.f32 %v1118_v58, %v1118_v58  ;;  %v1176_v15 = vadd.f32 %v1175_v10, %v1118_v58  ;;  %v856_v10 = vmul.f32 %v1874_v63, %v1874_v63 }
 0x102   : > { %v652_v57 = vpop.f32.mrf.mxu0 }
 0x103   : > { %746 = vst [vmem:[%s1866_s28 + $0x60] sm:$0xff] %v652_v57  ;;  %v851_v45 = vmul.f32 %v652_v57, %v652_v57  ;;  %v812_v50 = vadd.f32 %v811_v12, %v652_v57  ;;  %v1246_v49 = vadd.f32 %v1245_v14, %v1215_v11 }
 0x105   : > { %v882_v55 = vadd.f32 %v881_v18, %v851_v45  ;;  %v1222_v18 = vmul.f32 %v1902_v33, %v1902_v33 }
 0x108   : > { %v1947_v4 = vpop.f32.mrf.mxu2  ;;  %v1120_v13 = vpop.f32.mrf.mxu1 }
 0x109   : > { %762 = vst [vmem:[%s1866_s28 + $0xe0] sm:$0xff] %v1947_v4  ;;  %v1216_v17 = vmul.f32 %v1120_v13, %v1120_v13  ;;  %v1177_v23 = vadd.f32 %v1176_v15, %v1120_v13 }
 0x10a   : > { %v654_v8 = vpop.f32.mrf.mxu0 }
 0x10b   : > { %747 = vst [vmem:[%s1866_s28 + $0x68] sm:$0xff] %v654_v8  ;;  %v852_v20 = vmul.f32 %v654_v8, %v654_v8  ;;  %v813_v25 = vadd.f32 %v812_v50, %v654_v8  ;;  %v1247_v54 = vadd.f32 %v1246_v49, %v1216_v17  ;;  %v1219_v8 = vmul.f32 %v1876_v2, %v1876_v2 }
 0x10d   : > { %v883_v58 = vadd.f32 %v882_v55, %v852_v20  ;;  %v858_v20 = vmul.f32 %v1888_v19, %v1888_v19  ;;  %v859_v55 = vmul.f32 %v1895_v29, %v1895_v29 }
 0x110   : > { %v1954_v62 = vpop.f32.mrf.mxu2  ;;  %v1123_v7 = vpop.f32.mrf.mxu1 }
 0x111   : > { %763 = vst [vmem:[%s1866_s28 + $0xe8] sm:$0xff] %v1954_v62  ;;  %v1217_v24 = vmul.f32 %v1123_v7, %v1123_v7  ;;  %v1178_v27 = vadd.f32 %v1177_v23, %v1123_v7  ;;  %v1223_v23 = vmul.f32 %v1909_v39, %v1909_v39 }
 0x112   : > { %v657_v3 = vpop.f32.mrf.mxu0 }
 0x113   : > { %748 = vst [vmem:[%s1866_s28 + $0x70] sm:$0xff] %v657_v3  ;;  %v853_v26 = vmul.f32 %v657_v3, %v657_v3  ;;  %v814_v34 = vadd.f32 %v813_v25, %v657_v3  ;;  %v1248_v57 = vadd.f32 %v1247_v54, %v1217_v24 }
 0x115   : > { %v884_v61 = vadd.f32 %v883_v58, %v853_v26  ;;  %v1224_v26 = vmul.f32 %v1919_v43, %v1919_v43 }
 0x118   : > { %v1961_v30 = vpop.f32.mrf.mxu2  ;;  %v1125_v35 = vpop.f32.mrf.mxu1 }
 0x119   : > { %v1179_v38 = vadd.f32 %v1178_v27, %v1125_v35  ;;  %v1218_v60 = vmul.f32 %v1125_v35, %v1125_v35  ;;  %764 = vst [vmem:[%s1866_s28 + $0xf0] sm:$0xff] %v1961_v30 }
 0x11a   : > { %v659_v31 = vpop.f32.mrf.mxu0 }
 0x11b   : > { %749 = vst [vmem:[%s1866_s28 + $0x78] sm:$0xff] %v659_v31  ;;  %v815_v13 = vadd.f32 %v814_v34, %v659_v31  ;;  %v854_v37 = vmul.f32 %v659_v31, %v659_v31  ;;  %v1180_v0 = vadd.f32 %v1179_v38, %v1876_v2  ;;  %v1249_v1 = vadd.f32 %v1248_v57, %v1218_v60  ;;  %v1158_v57 = vpop.f32.mrf.mxu3 }
 0x11d   : > { %v816_v3 = vadd.f32 %v815_v13, %v1869_v53  ;;  %v885_v42 = vadd.f32 %v884_v61, %v854_v37  ;;  %v1181_v7 = vadd.f32 %v1180_v0, %v1886_v16  ;;  %v1250_v41 = vadd.f32 %v1249_v1, %v1219_v8 }
 0x11e   : > { %v1221_v53 = vmul.f32 %v1893_v28, %v1893_v28  ;;  %v857_v16 = vmul.f32 %v1881_v9, %v1881_v9  ;;  %v862_v37 = vmul.f32 %v1914_v40, %v1914_v40  ;;  %v1227_v8 = vmul.f32 %v1942_v59, %v1942_v59 }
 0x11f   : > { %v817_v11 = vadd.f32 %v816_v3, %v1874_v63  ;;  %v886_v2 = vadd.f32 %v885_v42, %v855_v5  ;;  %v1182_v45 = vadd.f32 %v1181_v7, %v1893_v28  ;;  %v1251_v14 = vadd.f32 %v1250_v41, %v1220_v6 }
 0x120   : > { %v1978_v12 = vpop.f32.mrf.mxu2  ;;  %v863_v5 = vmul.f32 %v1921_v44, %v1921_v44  ;;  %v864_v7 = vmul.f32 %v1928_v48, %v1928_v48 }
 0x121   : > { %v818_v15 = vadd.f32 %v817_v11, %v1881_v9  ;;  %v887_v17 = vadd.f32 %v886_v2, %v856_v10  ;;  %v1183_v63 = vadd.f32 %v1182_v45, %v1902_v33  ;;  %v1252_v50 = vadd.f32 %v1251_v14, %v1221_v53  ;;  %765 = vst [vmem:[%s1866_s28 + $0xf8] sm:$0xff] %v1978_v12 }
 0x122   : > { %v1229_v10 = vmul.f32 %v1959_v21, %v1959_v21  ;;  %v865_v2 = vmul.f32 %v1935_v52, %v1935_v52  ;;  %v1230_v14 = vmul.f32 %v1155_v46, %v1155_v46 }
 0x123   : > { %v819_v28 = vadd.f32 %v818_v15, %v1888_v19  ;;  %v888_v49 = vadd.f32 %v887_v17, %v857_v16  ;;  %v1184_v9 = vadd.f32 %v1183_v63, %v1909_v39  ;;  %v1253_v24 = vadd.f32 %v1252_v50, %v1222_v18  ;;  %v1160_v18 = vpop.f32.mrf.mxu3 }
 0x124   : > { %v860_v19 = vmul.f32 %v1900_v32, %v1900_v32  ;;  %v1225_v39 = vmul.f32 %v1926_v47, %v1926_v47  ;;  %v1231_v16 = vmul.f32 %v1158_v57, %v1158_v57  ;;  %v866_v15 = vmul.f32 %v1940_v56, %v1940_v56 }
 0x125   : > { %v820_v33 = vadd.f32 %v819_v28, %v1895_v29  ;;  %v889_v25 = vadd.f32 %v888_v49, %v858_v20  ;;  %v1254_v54 = vadd.f32 %v1253_v24, %v1223_v23  ;;  %v1185_v27 = vadd.f32 %v1184_v9, %v1919_v43 }
 0x126   : > { %v861_v29 = vmul.f32 %v1907_v36, %v1907_v36  ;;  %v1226_v43 = vmul.f32 %v1933_v51, %v1933_v51  ;;  %v1232_v49 = vmul.f32 %v1160_v18, %v1160_v18 }
 0x127   : > { %v821_v31 = vadd.f32 %v820_v33, %v1900_v32  ;;  %v890_v58 = vadd.f32 %v889_v25, %v859_v55  ;;  %v1186_v34 = vadd.f32 %v1185_v27, %v1926_v47  ;;  %v1255_v35 = vadd.f32 %v1254_v54, %v1224_v26 }
 0x128   : > { %v869_v25 = vmul.f32 %v1961_v30, %v1961_v30 }
 0x129   : > { %v822_v38 = vadd.f32 %v821_v31, %v1907_v36  ;;  %v891_v60 = vadd.f32 %v890_v58, %v860_v19  ;;  %v1187_v61 = vadd.f32 %v1186_v34, %v1933_v51  ;;  %v1256_v32 = vadd.f32 %v1255_v35, %v1225_v39 }
 0x12a   : > { %v1228_v51 = vmul.f32 %v1952_v22, %v1952_v22  ;;  %v870_v19 = vmul.f32 %v1978_v12, %v1978_v12 }
 0x12b   : > { %v823_v13 = vadd.f32 %v822_v38, %v1914_v40  ;;  %v892_v47 = vadd.f32 %v891_v60, %v861_v29  ;;  %v1188_v0 = vadd.f32 %v1187_v61, %v1942_v59  ;;  %v1257_v1 = vadd.f32 %v1256_v32, %v1226_v43 }
 0x12d   : > { %v824_v36 = vadd.f32 %v823_v13, %v1921_v44  ;;  %v893_v3 = vadd.f32 %v892_v47, %v862_v37  ;;  %v1189_v42 = vadd.f32 %v1188_v0, %v1952_v22  ;;  %v1258_v6 = vadd.f32 %v1257_v1, %v1227_v8 }
 0x12f   : > { %v825_v40 = vadd.f32 %v824_v36, %v1928_v48  ;;  %v894_v41 = vadd.f32 %v893_v3, %v863_v5  ;;  %v1190_v59 = vadd.f32 %v1189_v42, %v1959_v21  ;;  %v1259_v11 = vadd.f32 %v1258_v6, %v1228_v51 }
 0x131   : > { %v826_v44 = vadd.f32 %v825_v40, %v1935_v52  ;;  %v895_v22 = vadd.f32 %v894_v41, %v864_v7  ;;  %v1260_v53 = vadd.f32 %v1259_v11, %v1229_v10  ;;  %v1191_v45 = vadd.f32 %v1190_v59, %v1155_v46 }
 0x132   : > { %v867_v52 = vmul.f32 %v1947_v4, %v1947_v4 }
 0x133   : > { %v827_v48 = vadd.f32 %v826_v44, %v1940_v56  ;;  %v896_v17 = vadd.f32 %v895_v22, %v865_v2  ;;  %v1261_v21 = vadd.f32 %v1260_v53, %v1230_v14  ;;  %v1192_v63 = vadd.f32 %v1191_v45, %v1158_v57 }
 0x134   : > { %v868_v56 = vmul.f32 %v1954_v62, %v1954_v62 }
 0x135   : > { %v828_v50 = vadd.f32 %v827_v48, %v1947_v4  ;;  %v897_v20 = vadd.f32 %v896_v17, %v866_v15  ;;  %v1262_v28 = vadd.f32 %v1261_v21, %v1231_v16  ;;  %v1193_v46 = vadd.f32 %v1192_v63, %v1160_v18 }
 0x137   : > { %v829_v23 = vadd.f32 %v828_v50, %v1954_v62  ;;  %v898_v9 = vadd.f32 %v897_v20, %v867_v52  ;;  %v1194_v24 = vrot.slane %v1193_v46, 4  ;;  %v1263_v55 = vadd.f32 %v1262_v28, %v1232_v49 }
 0x139   : > { %v830_v33 = vadd.f32 %v829_v23, %v1961_v30  ;;  %v899_v26 = vadd.f32 %v898_v9, %v868_v56  ;;  %v1195_v4 = vadd.f32 %v1194_v24, %v1193_v46  ;;  %v1264_v54 = vrot.slane %v1263_v55, 4 }
 0x13b   : > { %v831_v27 = vadd.f32 %v830_v33, %v1978_v12  ;;  %v900_v62 = vadd.f32 %v899_v26, %v869_v25  ;;  %v1196_v31 = vrot.slane %v1195_v4, 2  ;;  %v1265_v58 = vadd.f32 %v1264_v54, %v1263_v55 }
 0x13d   : > { %v832_v39 = vrot.slane %v831_v27, 4  ;;  %v901_v34 = vadd.f32 %v900_v62, %v870_v19  ;;  %v1197_v35 = vadd.f32 %v1196_v31, %v1195_v4  ;;  %v1266_v29 = vrot.slane %v1265_v58, 2 }
 0x13f   : > { %v833_v30 = vadd.f32 %v832_v39, %v831_v27  ;;  %v902_v57 = vrot.slane %v901_v34, 4  ;;  %v1198_v38 = vrot.slane %v1197_v35, 1  ;;  %v1267_v60 = vadd.f32 %v1266_v29, %v1265_v58 }
 0x141   : > { %v834_v43 = vrot.slane %v833_v30, 2  ;;  %v903_v61 = vadd.f32 %v902_v57, %v901_v34  ;;  %v1199_v32 = vadd.f32 %v1198_v38, %v1197_v35  ;;  %v1268_v12 = vrot.slane %v1267_v60, 1 }
 0x143   : > { %v835_v13 = vadd.f32 %v834_v43, %v833_v30  ;;  %v904_v37 = vrot.slane %v903_v61, 2  ;;  %1200 = vst [vmem:[%s342_s8] sm:$0x1] %v1199_v32  ;;  %v1269_v47 = vadd.f32 %v1268_v12, %v1267_v60 }
 0x145   : > { %v836_v8 = vrot.slane %v835_v13, 1  ;;  %v905_v0 = vadd.f32 %v904_v37, %v903_v61  ;;  %1270 = vst [vmem:[%s342_s8 + $0x1] sm:$0x1] %v1269_v47 }
 0x147   : > { %v837_v1 = vadd.f32 %v836_v8, %v835_v13  ;;  %v906_v36 = vrot.slane %v905_v0, 1 }
 0x149   : > { %838 = vst [vmem:[%s338_s10] sm:$0x1] %v837_v1  ;;  %v907_v5 = vadd.f32 %v906_v36, %v905_v0 }
 0x14b   : > { %908 = vst [vmem:[%s338_s10 + $0x1] sm:$0x1] %v907_v5 }
 0x14c PF: > { %s17_s23 = sadd.s32 1, %s1709_s23   ;;  %s2078_s21 = smov %s1705_s22 }
 0x14d   : > { %p14_p6 = scmp.ge.s32.totalorder %s17_s23, 4   ;;  %s2079_s22 = smov %s2081_s24 }
 0x14f   :  { %16 = sbr.rel (!%p14_p6) target bundleno = 2 (0x2), region = 104 }

// kernel: skip_connection_block.7
= control target key start
LH: loop header
LB: loop body
LE: loop exit
PB: predicated region body
PF: predicated region fallthrough
CT: control target
= control target key end

     0   :  { %s1072_s24 = smov 0   ;;  %s1337_s0 = inlined_call_operand.vmem [shape: f32[512,128], index: 0, kind: input, shape index: {}]   ;;  %s1338_s1 = inlined_call_operand.vmem [shape: f32[1,128], index: 1, kind: input, shape index: {}]   ;;  %s1339_s2 = inlined_call_operand.vmem [shape: f32[1,128], index: 2, kind: input, shape index: {}]   ;;  %s1340_s3 = inlined_call_operand.vmem [shape: bf16[512,8], index: 3, kind: input, shape index: {}]   ;;  %s1341_s4 = inlined_call_operand.vmem [shape: bf16[8,128], index: 4, kind: input, shape index: {}]   ;;  %s1342_s5 = inlined_call_operand.vmem [shape: f32[1,128], index: 5, kind: input, shape index: {}]   ;;  %s1343_s6 = inlined_call_operand.vmem [shape: f32[1,128], index: 6, kind: input, shape index: {}]   ;;  %s1344_s7 = inlined_call_operand.vmem [shape: f32[512,128], index: 7, kind: output, shape index: {}]  }
   0x1 LB: > { %s900_s25 = sadd.s32 4294967295, %s1030_s24   ;;  %p904_p0 = scmp.ge.s32.totalorder %s1030_s24, 1  ;;  %s1030_s24 = sphi %s1072_s24, %s17_s24  }
   0x2   : > { %p249_p1 = scmp.lt.s32.totalorder %s1030_s24, 3 }
   0x4   : > { %p250_p2 = pnand %p904_p0, %p249_p1 }
   0x5   : > { %s905_s28 = sshll.u32 (!%p250_p2), %s900_s25, 5 }
   0x6   : > { %253 = sbr.rel (%p250_p2) target bundleno = 215 (0xd7), region = 48  ;;  %p287_p3 = scmp.lt.s32.totalorder (!%p250_p2), %s905_s28, 63 }
   0xb   : > { %v441_v0 = vld [vmem:[%s1341_s4] sm:$0xf]  ;;  %vm571_vm0 = vcmask 1043456   ;;  %s1346_s28 = smov (!%p287_p3, %s905_s28), 63  ;;  %vm522_vm1 = vcmask 64512  }
   0xc   : > { %v573_v1 = vsel %vm571_vm0, %v441_v0, 0  ;;  %s908_s29 = sshll.u32 %s1346_s28, 2  ;;  %s906_s10 = sshll.u32 %s1346_s28, 3  ;;  %v1114_v18 = vld [vmem:[%s1338_s1] ss:$0 sm:$0xff] }
   0xd   : > { %582 = vmatpush.bf16.msra.mxu0 %v573_v1  ;;  %1009 = vmatpush.bf16.msra.mxu1 %v573_v1  ;;  %s296_s9 = scalar_lea.vmem %s1340_s3, %s908_s29  ;;  %s1109_s13 = scalar_lea.vmem %s1337_s0, %s906_s10  ;;  %v1122_v22 = vld [vmem:[%s1339_s2] ss:$0 sm:$0xff] }
   0xe   : > { %1010 = vmatpush.bf16.msra.mxu2 %v573_v1  ;;  %1011 = vmatpush.bf16.msra.mxu3 %v573_v1  ;;  %v993_v2 = vld [vmem:[%s296_s9] sm:$0xff]  ;;  %v994_v6 = vld [vmem:[%s296_s9 + $0x8] sm:$0xff]  ;;  %v995_v10 = vld [vmem:[%s296_s9 + $0x10] sm:$0xff]  ;;  %s1152_s25 = scalar_lea.vmem %s1344_s7, %s906_s10 }
   0xf   : > { %v997_v3 = vld [vmem:[%s296_s9 + $0x20] sm:$0xff]  ;;  %v998_v7 = vld [vmem:[%s296_s9 + $0x28] sm:$0xff]  ;;  %v999_v11 = vld [vmem:[%s296_s9 + $0x30] sm:$0xff] }
  0x10   : > { %v1001_v4 = vld [vmem:[%s296_s9 + $0x40] sm:$0xff]  ;;  %975 = vmatmul.msk.bf16.vlgmr.msra.gmra.mxu0 %vm522_vm1, %v993_v2  ;;  %979 = vmatmul.msk.bf16.vlgmr.msra.gmra.mxu1 %vm522_vm1, %v997_v3  ;;  %v1002_v8 = vld [vmem:[%s296_s9 + $0x48] sm:$0xff]  ;;  %v1003_v12 = vld [vmem:[%s296_s9 + $0x50] sm:$0xff] }
  0x11   : > { %v1005_v5 = vld [vmem:[%s296_s9 + $0x60] sm:$0xff]  ;;  %983 = vmatmul.msk.bf16.vlgmr.msra.gmra.mxu2 %vm522_vm1, %v1001_v4  ;;  %v1006_v9 = vld [vmem:[%s296_s9 + $0x68] sm:$0xff]  ;;  %v1007_v13 = vld [vmem:[%s296_s9 + $0x70] sm:$0xff] }
  0x12   : > { %987 = vmatmul.msk.bf16.vlgmr.msra.gmra.mxu3 %vm522_vm1, %v1005_v5  ;;  %v996_v14 = vld [vmem:[%s296_s9 + $0x18] sm:$0xff]  ;;  %v305_v19 = vld [vmem:[%s1109_s13] sm:$0xff]  ;;  %v306_v34 = vld [vmem:[%s1109_s13 + $0x8] sm:$0xff] }
  0x13   : > { %v1000_v15 = vld [vmem:[%s296_s9 + $0x38] sm:$0xff]  ;;  %v313_v20 = vld [vmem:[%s1109_s13 + $0x40] sm:$0xff]  ;;  %v341_v21 = vmul.f32 %v1114_v18, %v305_v19  ;;  %v314_v35 = vld [vmem:[%s1109_s13 + $0x48] sm:$0xff]  ;;  %v342_v42 = vmul.f32 %v1114_v18, %v306_v34 }
  0x14   : > { %v1004_v16 = vld [vmem:[%s296_s9 + $0x58] sm:$0xff]  ;;  %v1127_v23 = vld [vmem:[%s1342_s5] ss:$0 sm:$0xff]  ;;  %v349_v24 = vmul.f32 %v1114_v18, %v313_v20  ;;  %v350_v43 = vmul.f32 %v1114_v18, %v314_v35  ;;  %v322_v58 = vld [vmem:[%s1109_s13 + $0x88] sm:$0xff] }
  0x15   : > { %v1008_v17 = vld [vmem:[%s296_s9 + $0x78] sm:$0xff]  ;;  %v1133_v25 = vld [vmem:[%s1343_s6] ss:$0 sm:$0xff]  ;;  %v377_v28 = vadd.f32 %v1122_v22, %v341_v21  ;;  %v378_v54 = vadd.f32 %v1122_v22, %v342_v42  ;;  %v330_v59 = vld [vmem:[%s1109_s13 + $0xc8] sm:$0xff]  ;;  %v358_v4 = vmul.f32 %v1114_v18, %v322_v58 }
  0x16   : > { %v385_v30 = vadd.f32 %v1122_v22, %v349_v24  ;;  %v321_v32 = vld [vmem:[%s1109_s13 + $0x80] sm:$0xff]  ;;  %v386_v56 = vadd.f32 %v1122_v22, %v350_v43  ;;  %v307_v62 = vld [vmem:[%s1109_s13 + $0x10] sm:$0xff]  ;;  %v366_v5 = vmul.f32 %v1114_v18, %v330_v59  ;;  %v308_v34 = vld [vmem:[%s1109_s13 + $0x18] sm:$0xff] }
  0x17   : > { %v329_v33 = vld [vmem:[%s1109_s13 + $0xc0] sm:$0xff]  ;;  %v357_v38 = vmul.f32 %v1114_v18, %v321_v32  ;;  %v315_v63 = vld [vmem:[%s1109_s13 + $0x50] sm:$0xff]  ;;  %v316_v35 = vld [vmem:[%s1109_s13 + $0x58] sm:$0xff] }
  0x18   : > { %v365_v39 = vmul.f32 %v1114_v18, %v329_v33  ;;  %v402_v19 = vadd.f32 %v1122_v22, %v366_v5  ;;  %v324_v58 = vld [vmem:[%s1109_s13 + $0x98] sm:$0xff] }
  0x19   : > { %v393_v48 = vadd.f32 %v1122_v22, %v357_v38  ;;  %v332_v59 = vld [vmem:[%s1109_s13 + $0xd8] sm:$0xff] }
  0x1a   : > { %v401_v50 = vadd.f32 %v1122_v22, %v365_v39 }
  0x20   : > { %976 = vmatmul.msk.bf16.gmra.mxu0 %vm522_vm1, %v994_v6  ;;  %980 = vmatmul.msk.bf16.gmra.mxu1 %vm522_vm1, %v998_v7 }
  0x21   : > { %984 = vmatmul.msk.bf16.gmra.mxu2 %vm522_vm1, %v1002_v8  ;;  %v343_v8 = vmul.f32 %v1114_v18, %v307_v62 }
  0x22   : > { %988 = vmatmul.msk.bf16.gmra.mxu3 %vm522_vm1, %v1006_v9  ;;  %v351_v9 = vmul.f32 %v1114_v18, %v315_v63 }
  0x30   : > { %977 = vmatmul.msk.bf16.gmra.mxu0 %vm522_vm1, %v995_v10  ;;  %981 = vmatmul.msk.bf16.gmra.mxu1 %vm522_vm1, %v999_v11 }
  0x31   : > { %985 = vmatmul.msk.bf16.gmra.mxu2 %vm522_vm1, %v1003_v12 }
  0x32   : > { %989 = vmatmul.msk.bf16.gmra.mxu3 %vm522_vm1, %v1007_v13 }
  0x40   : > { %978 = vmatmul.msk.bf16.gmra.mxu0 %vm522_vm1, %v996_v14  ;;  %982 = vmatmul.msk.bf16.gmra.mxu1 %vm522_vm1, %v1000_v15 }
  0x41   : > { %986 = vmatmul.msk.bf16.gmra.mxu2 %vm522_vm1, %v1004_v16  ;;  %v394_v16 = vadd.f32 %v1122_v22, %v358_v4 }
  0x42   : > { %990 = vmatmul.msk.bf16.gmra.mxu3 %vm522_vm1, %v1008_v17 }
  0x8d   : > { %v584_v26 = vpop.f32.mrf.mxu0  ;;  %v604_v27 = vpop.f32.mrf.mxu1 }
  0x8e   : > { %v668_v29 = vmul.f32 %v1127_v23, %v584_v26  ;;  %v676_v31 = vmul.f32 %v1127_v23, %v604_v27  ;;  %v379_v26 = vadd.f32 %v1122_v22, %v343_v8 }
  0x90   : > { %v704_v36 = vadd.f32 %v1133_v25, %v668_v29  ;;  %v712_v37 = vadd.f32 %v1133_v25, %v676_v31  ;;  %v331_v31 = vld [vmem:[%s1109_s13 + $0xd0] sm:$0xff] }
  0x92   : > { %v736_v40 = vadd.f32 %v704_v36, %v377_v28  ;;  %v744_v41 = vadd.f32 %v712_v37, %v385_v30  ;;  %v387_v28 = vadd.f32 %v1122_v22, %v351_v9  ;;  %v323_v30 = vld [vmem:[%s1109_s13 + $0x90] sm:$0xff] }
  0x94   : > { %v768_v44 = vmax.f32 %v736_v40, 0.0  ;;  %v776_v45 = vmax.f32 %v744_v41, 0.0  ;;  %v624_v46 = vpop.f32.mrf.mxu2  ;;  %v359_v40 = vmul.f32 %v1114_v18, %v323_v30  ;;  %v367_v41 = vmul.f32 %v1114_v18, %v331_v31 }
  0x95   : > { %v644_v47 = vpop.f32.mrf.mxu3  ;;  %v684_v49 = vmul.f32 %v1127_v23, %v624_v46  ;;  %v586_v52 = vpop.f32.mrf.mxu0 }
  0x96   : > { %v692_v51 = vmul.f32 %v1127_v23, %v644_v47  ;;  %v606_v53 = vpop.f32.mrf.mxu1  ;;  %800 = vst [vmem:[%s1152_s25] sm:$0xff] %v768_v44  ;;  %v669_v55 = vmul.f32 %v1127_v23, %v586_v52  ;;  %v344_v44 = vmul.f32 %v1114_v18, %v308_v34  ;;  %v395_v52 = vadd.f32 %v1122_v22, %v359_v40 }
  0x97   : > { %v677_v57 = vmul.f32 %v1127_v23, %v606_v53  ;;  %808 = vst [vmem:[%s1152_s25 + $0x40] sm:$0xff] %v776_v45  ;;  %v720_v60 = vadd.f32 %v1133_v25, %v684_v49  ;;  %v352_v45 = vmul.f32 %v1114_v18, %v316_v35 }
  0x98   : > { %v728_v61 = vadd.f32 %v1133_v25, %v692_v51  ;;  %v705_v0 = vadd.f32 %v1133_v25, %v669_v55 }
  0x99   : > { %v713_v1 = vadd.f32 %v1133_v25, %v677_v57  ;;  %v752_v2 = vadd.f32 %v720_v60, %v393_v48  ;;  %v380_v60 = vadd.f32 %v1122_v22, %v344_v44  ;;  %v388_v62 = vadd.f32 %v1122_v22, %v352_v45 }
  0x9a   : > { %v760_v3 = vadd.f32 %v728_v61, %v401_v50  ;;  %v737_v6 = vadd.f32 %v705_v0, %v378_v54  ;;  %v403_v54 = vadd.f32 %v1122_v22, %v367_v41  ;;  %v309_v0 = vld [vmem:[%s1109_s13 + $0x20] sm:$0xff] }
  0x9b   : > { %v745_v7 = vadd.f32 %v713_v1, %v386_v56  ;;  %v784_v10 = vmax.f32 %v752_v2, 0.0  ;;  %v317_v1 = vld [vmem:[%s1109_s13 + $0x60] sm:$0xff] }
  0x9c   : > { %v792_v11 = vmax.f32 %v760_v3, 0.0  ;;  %v769_v12 = vmax.f32 %v737_v6, 0.0  ;;  %v626_v14 = vpop.f32.mrf.mxu2  ;;  %v360_v6 = vmul.f32 %v1114_v18, %v324_v58 }
  0x9d   : > { %v777_v13 = vmax.f32 %v745_v7, 0.0  ;;  %v646_v15 = vpop.f32.mrf.mxu3  ;;  %816 = vst [vmem:[%s1152_s25 + $0x80] sm:$0xff] %v784_v10  ;;  %v685_v17 = vmul.f32 %v1127_v23, %v626_v14  ;;  %v589_v21 = vpop.f32.mrf.mxu0  ;;  %v368_v7 = vmul.f32 %v1114_v18, %v332_v59  ;;  %v345_v10 = vmul.f32 %v1114_v18, %v309_v0 }
  0x9e   : > { %v693_v20 = vmul.f32 %v1127_v23, %v646_v15  ;;  %v609_v24 = vpop.f32.mrf.mxu1  ;;  %824 = vst [vmem:[%s1152_s25 + $0xc0] sm:$0xff] %v792_v11  ;;  %v670_v27 = vmul.f32 %v1127_v23, %v589_v21  ;;  %v353_v11 = vmul.f32 %v1114_v18, %v317_v1 }
  0x9f   : > { %v678_v29 = vmul.f32 %v1127_v23, %v609_v24  ;;  %801 = vst [vmem:[%s1152_s25 + $0x8] sm:$0xff] %v769_v12  ;;  %v721_v32 = vadd.f32 %v1133_v25, %v685_v17  ;;  %v404_v21 = vadd.f32 %v1122_v22, %v368_v7 }
  0xa0   : > { %v729_v33 = vadd.f32 %v1133_v25, %v693_v20  ;;  %809 = vst [vmem:[%s1152_s25 + $0x48] sm:$0xff] %v777_v13  ;;  %v706_v36 = vadd.f32 %v1133_v25, %v670_v27  ;;  %v389_v30 = vadd.f32 %v1122_v22, %v353_v11 }
  0xa1   : > { %v714_v37 = vadd.f32 %v1133_v25, %v678_v29  ;;  %v753_v38 = vadd.f32 %v721_v32, %v394_v16  ;;  %v328_v32 = vld [vmem:[%s1109_s13 + $0xb8] sm:$0xff] }
  0xa2   : > { %v761_v39 = vadd.f32 %v729_v33, %v402_v19  ;;  %v738_v42 = vadd.f32 %v706_v36, %v379_v26  ;;  %v396_v19 = vadd.f32 %v1122_v22, %v360_v6  ;;  %v336_v33 = vld [vmem:[%s1109_s13 + $0xf8] sm:$0xff]  ;;  %v325_v36 = vld [vmem:[%s1109_s13 + $0xa0] sm:$0xff] }
  0xa3   : > { %v746_v43 = vadd.f32 %v714_v37, %v387_v28  ;;  %v785_v46 = vmax.f32 %v753_v38, 0.0  ;;  %v381_v28 = vadd.f32 %v1122_v22, %v345_v10  ;;  %v333_v37 = vld [vmem:[%s1109_s13 + $0xe0] sm:$0xff]  ;;  %v364_v38 = vmul.f32 %v1114_v18, %v328_v32 }
  0xa4   : > { %v793_v47 = vmax.f32 %v761_v39, 0.0  ;;  %v770_v48 = vmax.f32 %v738_v42, 0.0  ;;  %v629_v50 = vpop.f32.mrf.mxu2  ;;  %v372_v39 = vmul.f32 %v1114_v18, %v336_v33  ;;  %v310_v42 = vld [vmem:[%s1109_s13 + $0x28] sm:$0xff] }
  0xa5   : > { %v778_v49 = vmax.f32 %v746_v43, 0.0  ;;  %v649_v51 = vpop.f32.mrf.mxu3  ;;  %817 = vst [vmem:[%s1152_s25 + $0x88] sm:$0xff] %v785_v46  ;;  %v686_v53 = vmul.f32 %v1127_v23, %v629_v50  ;;  %v591_v56 = vpop.f32.mrf.mxu0  ;;  %v318_v43 = vld [vmem:[%s1109_s13 + $0x68] sm:$0xff]  ;;  %v1249_v46 = vadd.f32 %v1122_v22, %v364_v38  ;;  %v361_v50 = vmul.f32 %v1114_v18, %v325_v36 }
  0xa6   : > { %v694_v55 = vmul.f32 %v1127_v23, %v649_v51  ;;  %v611_v57 = vpop.f32.mrf.mxu1  ;;  %825 = vst [vmem:[%s1152_s25 + $0xc8] sm:$0xff] %v793_v47  ;;  %v671_v61 = vmul.f32 %v1127_v23, %v591_v56  ;;  %v1252_v47 = vadd.f32 %v1122_v22, %v372_v39  ;;  %v369_v51 = vmul.f32 %v1114_v18, %v333_v37 }
  0xa7   : > { %v679_v63 = vmul.f32 %v1127_v23, %v611_v57  ;;  %802 = vst [vmem:[%s1152_s25 + $0x10] sm:$0xff] %v770_v48  ;;  %v722_v2 = vadd.f32 %v1133_v25, %v686_v53 }
  0xa8   : > { %v730_v3 = vadd.f32 %v1133_v25, %v694_v55  ;;  %810 = vst [vmem:[%s1152_s25 + $0x50] sm:$0xff] %v778_v49  ;;  %v707_v4 = vadd.f32 %v1133_v25, %v671_v61  ;;  %v354_v55 = vmul.f32 %v1114_v18, %v318_v43  ;;  %v405_v0 = vadd.f32 %v1122_v22, %v369_v51  ;;  %v320_v51 = vld [vmem:[%s1109_s13 + $0x78] sm:$0xff] }
  0xa9   : > { %v715_v5 = vadd.f32 %v1133_v25, %v679_v63  ;;  %v754_v8 = vadd.f32 %v722_v2, %v395_v52 }
  0xaa   : > { %v762_v9 = vadd.f32 %v730_v3, %v403_v54  ;;  %v739_v12 = vadd.f32 %v707_v4, %v380_v60  ;;  %v346_v54 = vmul.f32 %v1114_v18, %v310_v42  ;;  %v390_v6 = vadd.f32 %v1122_v22, %v354_v55 }
  0xab   : > { %v747_v13 = vadd.f32 %v715_v5, %v388_v62  ;;  %v786_v14 = vmax.f32 %v754_v8, 0.0  ;;  %v397_v62 = vadd.f32 %v1122_v22, %v361_v50  ;;  %v326_v8 = vld [vmem:[%s1109_s13 + $0xa8] sm:$0xff]  ;;  %v312_v50 = vld [vmem:[%s1109_s13 + $0x38] sm:$0xff] }
  0xac   : > { %v794_v15 = vmax.f32 %v762_v9, 0.0  ;;  %v771_v16 = vmax.f32 %v739_v12, 0.0  ;;  %v631_v20 = vpop.f32.mrf.mxu2  ;;  %v382_v4 = vadd.f32 %v1122_v22, %v346_v54  ;;  %v334_v9 = vld [vmem:[%s1109_s13 + $0xe8] sm:$0xff]  ;;  %v311_v12 = vld [vmem:[%s1109_s13 + $0x30] sm:$0xff] }
  0xad   : > { %v779_v17 = vmax.f32 %v747_v13, 0.0  ;;  %v651_v24 = vpop.f32.mrf.mxu3  ;;  %818 = vst [vmem:[%s1152_s25 + $0x90] sm:$0xff] %v786_v14  ;;  %v687_v26 = vmul.f32 %v1127_v23, %v631_v20  ;;  %v594_v29 = vpop.f32.mrf.mxu0  ;;  %v319_v13 = vld [vmem:[%s1109_s13 + $0x70] sm:$0xff]  ;;  %v370_v20 = vmul.f32 %v1114_v18, %v334_v9 }
  0xae   : > { %v695_v27 = vmul.f32 %v1127_v23, %v651_v24  ;;  %v614_v31 = vpop.f32.mrf.mxu1  ;;  %826 = vst [vmem:[%s1152_s25 + $0xd0] sm:$0xff] %v794_v15  ;;  %v672_v34 = vmul.f32 %v1127_v23, %v594_v29 }
  0xaf   : > { %v680_v35 = vmul.f32 %v1127_v23, %v614_v31  ;;  %803 = vst [vmem:[%s1152_s25 + $0x18] sm:$0xff] %v771_v16  ;;  %v723_v40 = vadd.f32 %v1133_v25, %v687_v26  ;;  %v347_v26 = vmul.f32 %v1114_v18, %v311_v12  ;;  %v406_v36 = vadd.f32 %v1122_v22, %v370_v20 }
  0xb0   : > { %v731_v41 = vadd.f32 %v1133_v25, %v695_v27  ;;  %811 = vst [vmem:[%s1152_s25 + $0x58] sm:$0xff] %v779_v17  ;;  %v708_v44 = vadd.f32 %v1133_v25, %v672_v34  ;;  %v355_v27 = vmul.f32 %v1114_v18, %v319_v13 }
  0xb1   : > { %v716_v45 = vadd.f32 %v1133_v25, %v680_v35  ;;  %v755_v48 = vadd.f32 %v723_v40, %v396_v19  ;;  %v362_v19 = vmul.f32 %v1114_v18, %v326_v8  ;;  %v383_v40 = vadd.f32 %v1122_v22, %v347_v26 }
  0xb2   : > { %v763_v49 = vadd.f32 %v731_v41, %v404_v21  ;;  %v740_v52 = vadd.f32 %v708_v44, %v381_v28  ;;  %v391_v42 = vadd.f32 %v1122_v22, %v355_v27  ;;  %v327_v44 = vld [vmem:[%s1109_s13 + $0xb0] sm:$0xff] }
  0xb3   : > { %v748_v53 = vadd.f32 %v716_v45, %v389_v30  ;;  %v787_v56 = vmax.f32 %v755_v48, 0.0  ;;  %v398_v34 = vadd.f32 %v1122_v22, %v362_v19  ;;  %v335_v45 = vld [vmem:[%s1109_s13 + $0xf0] sm:$0xff] }
  0xb4   : > { %v795_v57 = vmax.f32 %v763_v49, 0.0  ;;  %v772_v58 = vmax.f32 %v740_v52, 0.0  ;;  %v634_v60 = vpop.f32.mrf.mxu2 }
  0xb5   : > { %v780_v59 = vmax.f32 %v748_v53, 0.0  ;;  %v654_v61 = vpop.f32.mrf.mxu3  ;;  %819 = vst [vmem:[%s1152_s25 + $0x98] sm:$0xff] %v787_v56  ;;  %v688_v63 = vmul.f32 %v1127_v23, %v634_v60  ;;  %v596_v2 = vpop.f32.mrf.mxu0  ;;  %v363_v56 = vmul.f32 %v1114_v18, %v327_v44  ;;  %v348_v60 = vmul.f32 %v1114_v18, %v312_v50 }
  0xb6   : > { %v696_v1 = vmul.f32 %v1127_v23, %v654_v61  ;;  %v616_v3 = vpop.f32.mrf.mxu1  ;;  %827 = vst [vmem:[%s1152_s25 + $0xd8] sm:$0xff] %v795_v57  ;;  %v673_v5 = vmul.f32 %v1127_v23, %v596_v2  ;;  %v371_v57 = vmul.f32 %v1114_v18, %v335_v45  ;;  %v356_v61 = vmul.f32 %v1114_v18, %v320_v51 }
  0xb7   : > { %v681_v7 = vmul.f32 %v1127_v23, %v616_v3  ;;  %804 = vst [vmem:[%s1152_s25 + $0x20] sm:$0xff] %v772_v58  ;;  %v724_v10 = vadd.f32 %v1133_v25, %v688_v63  ;;  %v384_v18 = vadd.f32 %v1122_v22, %v348_v60 }
  0xb8   : > { %v732_v11 = vadd.f32 %v1133_v25, %v696_v1  ;;  %812 = vst [vmem:[%s1152_s25 + $0x60] sm:$0xff] %v780_v59  ;;  %v709_v14 = vadd.f32 %v1133_v25, %v673_v5 }
  0xb9   : > { %v717_v15 = vadd.f32 %v1133_v25, %v681_v7  ;;  %v756_v16 = vadd.f32 %v724_v10, %v397_v62 }
  0xba   : > { %v764_v17 = vadd.f32 %v732_v11, %v405_v0  ;;  %v741_v21 = vadd.f32 %v709_v14, %v382_v4  ;;  %v399_v4 = vadd.f32 %v1122_v22, %v363_v56  ;;  %v392_v11 = vadd.f32 %v1122_v22, %v356_v61 }
  0xbb   : > { %v749_v24 = vadd.f32 %v717_v15, %v390_v6  ;;  %v788_v28 = vmax.f32 %v756_v16, 0.0  ;;  %v407_v6 = vadd.f32 %v1122_v22, %v371_v57 }
  0xbc   : > { %v796_v29 = vmax.f32 %v764_v17, 0.0  ;;  %v773_v30 = vmax.f32 %v741_v21, 0.0  ;;  %v636_v32 = vpop.f32.mrf.mxu2 }
  0xbd   : > { %v781_v31 = vmax.f32 %v749_v24, 0.0  ;;  %v656_v33 = vpop.f32.mrf.mxu3  ;;  %820 = vst [vmem:[%s1152_s25 + $0xa0] sm:$0xff] %v788_v28  ;;  %v689_v35 = vmul.f32 %v1127_v23, %v636_v32  ;;  %v599_v38 = vpop.f32.mrf.mxu0 }
  0xbe   : > { %v697_v37 = vmul.f32 %v1127_v23, %v656_v33  ;;  %v619_v39 = vpop.f32.mrf.mxu1  ;;  %828 = vst [vmem:[%s1152_s25 + $0xe0] sm:$0xff] %v796_v29  ;;  %v674_v41 = vmul.f32 %v1127_v23, %v599_v38 }
  0xbf   : > { %v682_v43 = vmul.f32 %v1127_v23, %v619_v39  ;;  %805 = vst [vmem:[%s1152_s25 + $0x28] sm:$0xff] %v773_v30  ;;  %v725_v48 = vadd.f32 %v1133_v25, %v689_v35 }
  0xc0   : > { %v733_v49 = vadd.f32 %v1133_v25, %v697_v37  ;;  %813 = vst [vmem:[%s1152_s25 + $0x68] sm:$0xff] %v781_v31  ;;  %v710_v52 = vadd.f32 %v1133_v25, %v674_v41 }
  0xc1   : > { %v718_v53 = vadd.f32 %v1133_v25, %v682_v43  ;;  %v757_v54 = vadd.f32 %v725_v48, %v398_v34 }
  0xc2   : > { %v765_v55 = vadd.f32 %v733_v49, %v406_v36  ;;  %v742_v58 = vadd.f32 %v710_v52, %v383_v40 }
  0xc3   : > { %v750_v59 = vadd.f32 %v718_v53, %v391_v42  ;;  %v789_v62 = vmax.f32 %v757_v54, 0.0 }
  0xc4   : > { %v797_v63 = vmax.f32 %v765_v55, 0.0  ;;  %v774_v0 = vmax.f32 %v742_v58, 0.0  ;;  %v639_v2 = vpop.f32.mrf.mxu2 }
  0xc5   : > { %v782_v1 = vmax.f32 %v750_v59, 0.0  ;;  %v659_v3 = vpop.f32.mrf.mxu3  ;;  %821 = vst [vmem:[%s1152_s25 + $0xa8] sm:$0xff] %v789_v62  ;;  %v690_v5 = vmul.f32 %v1127_v23, %v639_v2  ;;  %v601_v8 = vpop.f32.mrf.mxu0 }
  0xc6   : > { %v698_v7 = vmul.f32 %v1127_v23, %v659_v3  ;;  %v621_v9 = vpop.f32.mrf.mxu1  ;;  %829 = vst [vmem:[%s1152_s25 + $0xe8] sm:$0xff] %v797_v63  ;;  %v675_v10 = vmul.f32 %v1127_v23, %v601_v8 }
  0xc7   : > { %v683_v12 = vmul.f32 %v1127_v23, %v621_v9  ;;  %806 = vst [vmem:[%s1152_s25 + $0x30] sm:$0xff] %v774_v0  ;;  %v726_v13 = vadd.f32 %v1133_v25, %v690_v5 }
  0xc8   : > { %v734_v14 = vadd.f32 %v1133_v25, %v698_v7  ;;  %814 = vst [vmem:[%s1152_s25 + $0x70] sm:$0xff] %v782_v1  ;;  %v711_v15 = vadd.f32 %v1133_v25, %v675_v10 }
  0xc9   : > { %v719_v16 = vadd.f32 %v1133_v25, %v683_v12  ;;  %v758_v17 = vadd.f32 %v726_v13, %v399_v4 }
  0xca   : > { %v766_v19 = vadd.f32 %v734_v14, %v407_v6  ;;  %v743_v20 = vadd.f32 %v711_v15, %v384_v18 }
  0xcb   : > { %v751_v22 = vadd.f32 %v719_v16, %v392_v11  ;;  %v790_v21 = vmax.f32 %v758_v17, 0.0 }
  0xcc   : > { %v798_v24 = vmax.f32 %v766_v19, 0.0  ;;  %v775_v26 = vmax.f32 %v743_v20, 0.0  ;;  %v641_v28 = vpop.f32.mrf.mxu2 }
  0xcd   : > { %v783_v27 = vmax.f32 %v751_v22, 0.0  ;;  %v661_v29 = vpop.f32.mrf.mxu3  ;;  %822 = vst [vmem:[%s1152_s25 + $0xb0] sm:$0xff] %v790_v21  ;;  %v691_v30 = vmul.f32 %v1127_v23, %v641_v28 }
  0xce   : > { %v699_v31 = vmul.f32 %v1127_v23, %v661_v29  ;;  %830 = vst [vmem:[%s1152_s25 + $0xf0] sm:$0xff] %v798_v24 }
  0xcf   : > { %807 = vst [vmem:[%s1152_s25 + $0x38] sm:$0xff] %v775_v26  ;;  %v727_v32 = vadd.f32 %v1133_v25, %v691_v30 }
  0xd0   : > { %v735_v33 = vadd.f32 %v1133_v25, %v699_v31  ;;  %815 = vst [vmem:[%s1152_s25 + $0x78] sm:$0xff] %v783_v27 }
  0xd1   : > { %v759_v34 = vadd.f32 %v727_v32, %v1249_v46 }
  0xd2   : > { %v767_v35 = vadd.f32 %v735_v33, %v1252_v47 }
  0xd3   : > { %v791_v36 = vmax.f32 %v759_v34, 0.0 }
  0xd4   : > { %v799_v37 = vmax.f32 %v767_v35, 0.0 }
  0xd5   : > { %823 = vst [vmem:[%s1152_s25 + $0xb8] sm:$0xff] %v791_v36 }
  0xd6   : > { %831 = vst [vmem:[%s1152_s25 + $0xf8] sm:$0xff] %v799_v37 }
  0xd7 PF: > { %s17_s24 = sadd.s32 1, %s1030_s24  }
  0xd8   : > { %p14_p4 = scmp.ge.s32.totalorder %s17_s24, 4  }
  0xda   :  { %16 = sbr.rel (!%p14_p4) target bundleno = 1 (0x1), region = 81 }

</bundles_post_ra>
